<compile_context>
chip_gen: v7x
topology: tpu7x:2x2x1
jax: 0.10.0
libtpu: 0.0.40
codegen_flags: <defaults>
</compile_context>

<pallas_src>
import functools

import jax
import jax.numpy as jnp
from jax import lax
from jax.experimental import pallas as pl
from jax.experimental.pallas import tpu as pltpu

_LANE = 128      # H is padded to a multiple of this so r/z/n gate slices are lane-aligned
_SUBLANE = 16    # bf16 sublane packing: B is padded to a multiple of this for unmasked stores


def _round_up(x, m):
    return ((x + m - 1) // m) * m


def _fused_gru2_kernel(len_ref, x_ref, wi1_ref, wh1_ref, b1_ref,
                       wi2_ref, wh2_ref, b2_ref,
                       out_ref, hfin_ref,
                       h1_sc, h2_sc, y1_sc, gx_sc):
    """Fused 2-layer masked GRU over one time chunk (2-D, sublane/lane-aligned blocks).

    len_ref : [Bp, 1]   int32  valid lengths (padded batch rows have length 0)
    x_ref   : [Tc*Bp, D] bf16  input chunk, row = t*Bp + b (time-major flattened)
    wi*_ref : [Din, 3Hp] bf16  gate-concatenated input weights  (cols = [r | z | n])
    wh*_ref : [Hp, 3Hp]  bf16  gate-concatenated recurrent weights
    b*_ref  : [2, 3Hp]   f32   row 0 = [b_ir+b_hr | b_iz+b_hz | b_in], row 1 = [b_hn | 0 | 0]
    out_ref : [Tc*Bp, Hp] bf16 layer-2 output chunk (zeros where t >= len[b])
    hfin_ref: [Bp, Hp]   f32   layer-2 hidden at each sample's last valid step
    h1_sc, h2_sc : [Bp, Hp] f32  recurrent carries (persist across time chunks)
    y1_sc   : [Tc*Bp, Hp]  bf16  layer-1 chunk output (inter-layer VMEM buffer)
    gx_sc   : [Tc*Bp, 3Hp] f32   hoisted input-projection buffer, reused by both layers
    """
    rows, _ = x_ref.shape
    Bp, Hp = h1_sc.shape
    Tc = rows // Bp
    t0 = pl.program_id(0) * Tc
    unroll = min(8, Tc)

    @pl.when(pl.program_id(0) == 0)
    def _init():
        h1_sc[...] = jnp.zeros_like(h1_sc)
        h2_sc[...] = jnp.zeros_like(h2_sc)

    # Hoisted once per chunk: remaining valid steps of each sample within this chunk.
    rem = len_ref[...] - t0                                       # [Bp, 1] int32

    def run_layer(src_bf16, wi_ref, wh_ref, b_ref, h_ref, store_y):
        # One gate-concatenated chunk GEMM (input biases folded in). Only the tiny
        # [Bp, Hp] x [Hp, 3Hp] recurrent matmul remains on the serial critical path.
        gx_sc[...] = (jnp.dot(src_bf16, wi_ref[...],
                              preferred_element_type=jnp.float32) + b_ref[0:1, :])
        wh = wh_ref[...]                                          # [Hp, 3Hp] bf16, hoisted
        b_hn = b_ref[1:2, 0:Hp]                                   # [1, Hp] f32, hoisted

        def step(t, h):                                           # h: [Bp, Hp] f32
            row0 = pl.multiple_of(t * Bp, Bp)
            gx = gx_sc[pl.ds(row0, Bp), :]                        # [Bp, 3Hp] f32 (w/ biases)
            gh = jnp.dot(h.astype(jnp.bfloat16), wh,
                         preferred_element_type=jnp.float32)      # [Bp, 3Hp] f32
            # gate element-wise math stays f32 (v5e has no bf16 VPU/EUP path)
            r = jax.nn.sigmoid(gx[:, 0:Hp] + gh[:, 0:Hp])
            z = jax.nn.sigmoid(gx[:, Hp:2 * Hp] + gh[:, Hp:2 * Hp])
            n = jnp.tanh(gx[:, 2 * Hp:3 * Hp] + r * (gh[:, 2 * Hp:3 * Hp] + b_hn))
            h_t = n + z * (h - n)                                 # == (1-z)*n + z*h
            mask = t < rem                                        # [Bp, 1] bool (scalar splat)
            store_y(row0, jnp.where(mask, h_t, 0.0))
            return jnp.where(mask, h_t, h)

        h_ref[...] = lax.fori_loop(0, Tc, step, h_ref[...], unroll=unroll)

    # ---- layer 1: pipelined x block -> bf16 chunk buffer in VMEM (no HBM round trip) ----
    def store_y1(row0, y):
        y1_sc[pl.ds(row0, Bp), :] = y.astype(jnp.bfloat16)
    run_layer(x_ref[...], wi1_ref, wh1_ref, b1_ref, h1_sc, store_y1)

    # ---- layer 2: consumes layer-1 output straight from VMEM, writes pipelined out block ----
    def store_y2(row0, y):
        out_ref[pl.ds(row0, Bp), :] = y.astype(out_ref.dtype)
    run_layer(y1_sc[...], wi2_ref, wh2_ref, b2_ref, h2_sc, store_y2)

    # Final hidden state needs exactly one store, on the last chunk.
    @pl.when(pl.program_id(0) == pl.num_programs(0) - 1)
    def _finalize():
        hfin_ref[...] = h2_sc[...]


def init_rels_model_params(key, input_dim, hidden_dim, num_layers=2):
    """torch.nn.GRU-shaped parameters (gate order r, z, n), uniform(-k, k) init."""
    params = []
    k = 1.0 / float(hidden_dim) ** 0.5
    for layer in range(num_layers):
        din = input_dim if layer == 0 else hidden_dim
        key, k1, k2, k3, k4 = jax.random.split(key, 5)
        params.append(dict(
            w_ih=jax.random.uniform(k1, (3 * hidden_dim, din), jnp.float32, -k, k),
            w_hh=jax.random.uniform(k2, (3 * hidden_dim, hidden_dim), jnp.float32, -k, k),
            b_ih=jax.random.uniform(k3, (3 * hidden_dim,), jnp.float32, -k, k),
            b_hh=jax.random.uniform(k4, (3 * hidden_dim,), jnp.float32, -k, k),
        ))
    return params


def prepare_kernel_params(torch_params):
    """Repack torch-layout GRU weights into the kernel's gate-concatenated, lane-padded layout.

    Per layer: wi [Din(_pad), 3*H_pad] bf16, wh [H_pad, 3*H_pad] bf16, b [2, 3*H_pad] f32 with
    b[0] = [b_ir+b_hr | b_iz+b_hz | b_in] and b[1] = [b_hn | 0 | 0].
    Padding columns/rows are zero, so the padded hidden lanes stay exactly zero.
    """
    packed = []
    for layer, p in enumerate(torch_params):
        w_ih = jnp.asarray(p["w_ih"], jnp.float32)   # [3H, Din]
        w_hh = jnp.asarray(p["w_hh"], jnp.float32)   # [3H, H]
        b_ih = jnp.asarray(p["b_ih"], jnp.float32)
        b_hh = jnp.asarray(p["b_hh"], jnp.float32)
        H = w_hh.shape[1]
        Hp = _round_up(H, _LANE)
        din = w_ih.shape[1]
        din_pad = din if layer == 0 else Hp          # layer>0 input is the padded hidden dim

        wi_g, wh_g = [], []
        for g in range(3):
            wi = w_ih[g * H:(g + 1) * H, :].T        # [din, H]
            wi_g.append(jnp.pad(wi, ((0, din_pad - din), (0, Hp - H))))
            wh = w_hh[g * H:(g + 1) * H, :].T        # [H, H]
            wh_g.append(jnp.pad(wh, ((0, Hp - H), (0, Hp - H))))
        wi = jnp.concatenate(wi_g, axis=1).astype(jnp.bfloat16)   # [din_pad, 3Hp]
        wh = jnp.concatenate(wh_g, axis=1).astype(jnp.bfloat16)   # [Hp, 3Hp]

        padv = lambda v: jnp.pad(v, (0, Hp - H))
        bx = jnp.concatenate([padv(b_ih[0:H] + b_hh[0:H]),
                              padv(b_ih[H:2 * H] + b_hh[H:2 * H]),
                              padv(b_ih[2 * H:3 * H])])
        bhn = jnp.concatenate([padv(b_hh[2 * H:3 * H]), jnp.zeros((2 * Hp,), jnp.float32)])
        b = jnp.stack([bx, bhn], axis=0).astype(jnp.float32)      # [2, 3Hp]
        packed.append((wi, wh, b))
    return packed


def _resident_spec(shape):
    """Grid-invariant (weights/bias) block: full array, single-buffered."""
    nd = len(shape)
    return pl.BlockSpec(shape, lambda *_: (0,) * nd, pipeline_mode=pl.Buffered(1))


def rels_model_forward(x, lengths, kernel_params, max_len_out, hidden_dim=None,
                       time_chunk=None):
    """x: [B, T, D] batch-first f32 (PyTorch convention), lengths: [B] int32.

    Returns (final_hidden_state [B, H], out_unpacked_combine [B, max_len_out, H]).
    """
    assert len(kernel_params) == 2, "fused kernel implements the module default numb_layers=2"
    (wi1, wh1, b1), (wi2, wh2, b2) = kernel_params
    B, T, D = x.shape
    Hp = wh1.shape[0]
    H = Hp if hidden_dim is None else int(hidden_dim)
    assert wi1.shape == (D, 3 * Hp) and wh1.shape == (Hp, 3 * Hp)
    assert wi2.shape == (Hp, 3 * Hp) and wh2.shape == (Hp, 3 * Hp)
    assert b1.shape == (2, 3 * Hp) and b2.shape == (2, 3 * Hp)

    Bp = _round_up(max(B, 1), _SUBLANE)

    # ---- per-generation VMEM budget -> vmem limit and (optionally) time-chunk size ----
    try:
        vmem_cap = int(pltpu.get_tpu_info().vmem_capacity_bytes)
    except Exception:
        vmem_cap = 128 * 1024 * 1024                 # conservative default if query unavailable
    vmem_budget = int(vmem_cap * 0.85)               # headroom for compiler-internal scratch

    w_bytes = sum(int(a.size) * a.dtype.itemsize for a in (wi1, wh1, b1, wi2, wh2, b2))
    per_tc = Bp * (2 * D * 2          # x block, double-buffered bf16
                   + 2 * Hp * 2       # out block, double-buffered bf16
                   + Hp * 2           # y1 inter-layer scratch, bf16
                   + 3 * Hp * 4)      # gx scratch, f32 (reused by both layers)
    fixed = (w_bytes                              # single-buffered resident weights/biases
             + 4 * Bp * Hp * 4                    # h1/h2 carries + hfin block (with margin)
             + 8 * Bp * 3 * Hp * 4)               # per-step temporaries (gh, gates) headroom

    if time_chunk is None:
        tc = int((vmem_budget * 3 // 5 - fixed) // max(per_tc, 1))
        tc = max(1, min(tc, T, 512))
    else:
        tc = max(1, min(int(time_chunk), T))
    n_chunks = -(-T // tc)
    T_pad = n_chunks * tc

    est = fixed + tc * per_tc
    vmem_limit = int(min(vmem_budget, max(32 * 1024 * 1024, 2 * est)))

    # ---- relayout: batch-first -> time-major, pad (T, B), flatten to 2-D aligned rows ----
    x_tm = jnp.transpose(x, (1, 0, 2)).astype(jnp.bfloat16)              # [T, B, D]
    x_tm = jnp.pad(x_tm, ((0, T_pad - T), (0, Bp - B), (0, 0)))          # masked anyway
    x2d = x_tm.reshape(T_pad * Bp, D)
    lens2d = jnp.zeros((Bp, 1), jnp.int32).at[:B, 0].set(lengths.astype(jnp.int32))

    rows_blk = tc * Bp

    out2d, hfin_p = pl.pallas_call(
        _fused_gru2_kernel,
        out_shape=(jax.ShapeDtypeStruct((T_pad * Bp, Hp), jnp.bfloat16),
                   jax.ShapeDtypeStruct((Bp, Hp), jnp.float32)),
        grid=(n_chunks,),
        in_specs=[
            pl.BlockSpec((Bp, 1), lambda t: (0, 0)),             # lengths (VMEM resident)
            pl.BlockSpec((rows_blk, D), lambda t: (t, 0)),       # x, pipelined over time chunks
            _resident_spec((D, 3 * Hp)),                         # layer-1 W_ih (gate-concat)
            _resident_spec((Hp, 3 * Hp)),                        # layer-1 W_hh
            _resident_spec((2, 3 * Hp)),                         # layer-1 biases
            _resident_spec((Hp, 3 * Hp)),                        # layer-2 W_ih
            _resident_spec((Hp, 3 * Hp)),                        # layer-2 W_hh
            _resident_spec((2, 3 * Hp)),                         # layer-2 biases
        ],
        out_specs=(
            pl.BlockSpec((rows_blk, Hp), lambda t: (t, 0)),      # bf16 output, pipelined
            pl.BlockSpec((Bp, Hp), lambda t: (0, 0)),            # final hidden (revisited)
        ),
        scratch_shapes=[
            pltpu.VMEM((Bp, Hp), jnp.float32),                   # layer-1 hidden carry
            pltpu.VMEM((Bp, Hp), jnp.float32),                   # layer-2 hidden carry
            pltpu.VMEM((rows_blk, Hp), jnp.bfloat16),            # layer-1 chunk output buffer
            pltpu.VMEM((rows_blk, 3 * Hp), jnp.float32),         # gx buffer (reused per layer)
        ],
        compiler_params=pltpu.CompilerParams(
            dimension_semantics=("arbitrary",),                  # sequential recurrence in time
            vmem_limit_bytes=vmem_limit),
    )(lens2d, x2d, wi1, wh1, b1, wi2, wh2, b2)

    out_tm = out2d.reshape(T_pad, Bp, Hp)
    # pad_packed_sequence pads only up to max(lengths); upcast to f32 to match the module's
    # output dtype (drop the cast if the consumer accepts bf16 activations).
    out = jnp.transpose(out_tm[:max_len_out, :B, :H], (1, 0, 2)).astype(jnp.float32)
    return hfin_p[:B, :H], out


def _gru_layer_ref(x_tm_bf16, lengths, wi, wh, b):
    """Pure-JAX masked GRU layer mirroring the kernel's dtype policy (bf16 matmuls, f32 math)."""
    T, B, _ = x_tm_bf16.shape
    Hp = wh.shape[0]
    bx, bhn = b[0], b[1, :Hp]

    def step(h, xt_t):
        x_t, t = xt_t
        gx = jnp.dot(x_t, wi, preferred_element_type=jnp.float32) + bx
        gh = jnp.dot(h.astype(jnp.bfloat16), wh, preferred_element_type=jnp.float32)
        r = jax.nn.sigmoid(gx[:, 0:Hp] + gh[:, 0:Hp])
        z = jax.nn.sigmoid(gx[:, Hp:2 * Hp] + gh[:, Hp:2 * Hp])
        n = jnp.tanh(gx[:, 2 * Hp:] + r * (gh[:, 2 * Hp:] + bhn))
        h_t = n + z * (h - n)
        mask = (t < lengths)[:, None]
        return jnp.where(mask, h_t, h), jnp.where(mask, h_t, 0.0)

    h0 = jnp.zeros((B, Hp), jnp.float32)
    h_fin, ys = lax.scan(step, h0, (x_tm_bf16, jnp.arange(T)))
    return ys, h_fin


if __name__ == "__main__":
    # Small shapes consistent with the module's forward (x: [batch, max_seq_len, input_dim]).
    B, T, D, H, L = 2, 8, 32, 32, 2
    key = jax.random.PRNGKey(0)
    kx, kp = jax.random.split(key)

    x = jax.random.normal(kx, (B, T, D), jnp.float32)
    lengths_list = [8, 5]                                    # len_original_x
    lengths = jnp.array(lengths_list, jnp.int32)
    max_len_out = int(max(lengths_list))                     # pad_packed_sequence output length

    torch_params = init_rels_model_params(kp, D, H, L)
    kparams = prepare_kernel_params(torch_params)

    # time_chunk=4 -> 2 grid steps: exercises pipelined chunking + cross-chunk hidden carries.
    fwd = jax.jit(functools.partial(rels_model_forward, max_len_out=max_len_out,
                                    hidden_dim=H, time_chunk=4))
    final_hidden, out_padded = fwd(x, lengths, kparams)
    final_hidden = jax.block_until_ready(final_hidden)
    out_padded = jax.block_until_ready(out_padded)

    assert final_hidden.shape == (B, H)
    assert out_padded.shape == (B, max_len_out, H)

    # Pure-JAX reference of the same masked, bf16-matmul GRU stack (same packed weights).
    cur = jnp.transpose(x, (1, 0, 2)).astype(jnp.bfloat16)   # [T, B, D]
    h_ref = None
    for (wi, wh, b) in kparams:
        ys, h_ref = _gru_layer_ref(cur, lengths, wi, wh, b)
        cur = ys.astype(jnp.bfloat16)                        # same bf16 hand-off as the kernel
    out_ref = jnp.transpose(cur, (1, 0, 2))[:, :max_len_out, :H].astype(jnp.float32)
    h_ref = h_ref[:, :H]

    assert jnp.allclose(final_hidden, h_ref, atol=2e-3, rtol=2e-3), \
        float(jnp.max(jnp.abs(final_hidden - h_ref)))
    assert jnp.allclose(out_padded, out_ref, atol=2e-3, rtol=2e-3), \
        float(jnp.max(jnp.abs(out_padded - out_ref)))

    print("KERNEL_OK")
</pallas_src>

<mosaic_0001>
module attributes {stable_mosaic.version = 11 : i64} {
  func.func @_fused_gru2_kernel(%arg0: i32, %arg1: memref<16x1xi32, #tpu.memory_space<vmem>>, %arg2: memref<64x32xbf16, #tpu.memory_space<vmem>>, %arg3: memref<32x384xbf16, #tpu.memory_space<vmem>>, %arg4: memref<128x384xbf16, #tpu.memory_space<vmem>>, %arg5: memref<2x384xf32, #tpu.memory_space<vmem>>, %arg6: memref<128x384xbf16, #tpu.memory_space<vmem>>, %arg7: memref<128x384xbf16, #tpu.memory_space<vmem>>, %arg8: memref<2x384xf32, #tpu.memory_space<vmem>>, %arg9: memref<64x128xbf16, #tpu.memory_space<vmem>>, %arg10: memref<16x128xf32, #tpu.memory_space<vmem>>, %arg11: memref<16x128xf32, #tpu.memory_space<vmem>>, %arg12: memref<16x128xf32, #tpu.memory_space<vmem>>, %arg13: memref<64x128xbf16, #tpu.memory_space<vmem>>, %arg14: memref<64x384xf32, #tpu.memory_space<vmem>>) attributes {dimension_semantics = [#tpu.dimension_semantics<arbitrary>], iteration_bounds = array<i64: 2>, scalar_prefetch = 0 : i64, scratch_operands = 4 : i64, tpu.core_type = #tpu.core_type<tc>, window_params = [{pipeline_mode = #tpu.pipeline_mode<synchronous>, transform_indices = @transform_0, window_bounds = array<i64: 16, 1>}, {transform_indices = @transform_1, window_bounds = array<i64: 64, 32>}, {pipeline_mode = #tpu.pipeline_mode<synchronous>, transform_indices = @transform_2, window_bounds = array<i64: 32, 384>}, {pipeline_mode = #tpu.pipeline_mode<synchronous>, transform_indices = @transform_3, window_bounds = array<i64: 128, 384>}, {pipeline_mode = #tpu.pipeline_mode<synchronous>, transform_indices = @transform_4, window_bounds = array<i64: 2, 384>}, {pipeline_mode = #tpu.pipeline_mode<synchronous>, transform_indices = @transform_5, window_bounds = array<i64: 128, 384>}, {pipeline_mode = #tpu.pipeline_mode<synchronous>, transform_indices = @transform_6, window_bounds = array<i64: 128, 384>}, {pipeline_mode = #tpu.pipeline_mode<synchronous>, transform_indices = @transform_7, window_bounds = array<i64: 2, 384>}, {transform_indices = @transform_8, window_bounds = array<i64: 64, 128>}, {pipeline_mode = #tpu.pipeline_mode<synchronous>, transform_indices = @transform_9, window_bounds = array<i64: 16, 128>}]} {
    %c4_i32 = arith.constant 4 : i32
    %0 = arith.muli %arg0, %c4_i32 : i32
    %c0_i32 = arith.constant 0 : i32
    %1 = arith.cmpi eq, %arg0, %c0_i32 : i32
    %2 = arith.extui %1 : i1 to i32
    %c0_i32_0 = arith.constant 0 : i32
    %3 = arith.cmpi ne, %2, %c0_i32_0 : i32
    scf.if %3 {
      %cst_98 = arith.constant 0.000000e+00 : f32
      %384 = vector.broadcast %cst_98 : f32 to vector<16x128xf32>
      %c0_99 = arith.constant 0 : index
      %c0_100 = arith.constant 0 : index
      %385 = vector.load %arg11[%c0_99, %c0_100] : memref<16x128xf32, #tpu.memory_space<vmem>>, vector<16x128xf32>
      tpu.vector_store %arg11[%c0_99, %c0_100], %384 {strides = array<i32>} : memref<16x128xf32, #tpu.memory_space<vmem>>, vector<16x128xf32>,
      %cst_101 = arith.constant 0.000000e+00 : f32
      %386 = vector.broadcast %cst_101 : f32 to vector<16x128xf32>
      %c0_102 = arith.constant 0 : index
      %c0_103 = arith.constant 0 : index
      %387 = vector.load %arg12[%c0_102, %c0_103] : memref<16x128xf32, #tpu.memory_space<vmem>>, vector<16x128xf32>
      tpu.vector_store %arg12[%c0_102, %c0_103], %386 {strides = array<i32>} : memref<16x128xf32, #tpu.memory_space<vmem>>, vector<16x128xf32>,
    } else {
    }
    %c0 = arith.constant 0 : index
    %c0_1 = arith.constant 0 : index
    %4 = vector.load %arg1[%c0, %c0_1] : memref<16x1xi32, #tpu.memory_space<vmem>>, vector<16x1xi32>
    %5 = vector.broadcast %0 : i32 to vector<16x1xi32>
    %6 = arith.subi %4, %5 : vector<16x1xi32>
    %c0_2 = arith.constant 0 : index
    %c0_3 = arith.constant 0 : index
    %7 = vector.load %arg2[%c0_2, %c0_3] : memref<64x32xbf16, #tpu.memory_space<vmem>>, vector<64x32xbf16>
    %c0_4 = arith.constant 0 : index
    %c0_5 = arith.constant 0 : index
    %8 = vector.load %arg3[%c0_4, %c0_5] : memref<32x384xbf16, #tpu.memory_space<vmem>>, vector<32x384xbf16>
    %cst = arith.constant dense<0.000000e+00> : vector<64x384xf32>
    %9 = tpu.matmul %7, %8, %cst {dimension_numbers = #tpu.dot_dimension_numbers<[1], [0], [0], [1], [0, 0, 1, 1], [], []>} : vector<64x32xbf16>, vector<32x384xbf16>, vector<64x384xf32> -> vector<64x384xf32>
    %c0_6 = arith.constant 0 : index
    %c0_7 = arith.constant 0 : index
    %10 = vector.load %arg5[%c0_6, %c0_7] : memref<2x384xf32, #tpu.memory_space<vmem>>, vector<1x384xf32>
    %11 = vector.broadcast %10 : vector<1x384xf32> to vector<64x384xf32>
    %12 = arith.addf %9, %11 : vector<64x384xf32>
    %c0_8 = arith.constant 0 : index
    %c0_9 = arith.constant 0 : index
    %13 = vector.load %arg14[%c0_8, %c0_9] : memref<64x384xf32, #tpu.memory_space<vmem>>, vector<64x384xf32>
    tpu.vector_store %arg14[%c0_8, %c0_9], %12 {strides = array<i32>} : memref<64x384xf32, #tpu.memory_space<vmem>>, vector<64x384xf32>,
    %c0_10 = arith.constant 0 : index
    %c0_11 = arith.constant 0 : index
    %14 = vector.load %arg4[%c0_10, %c0_11] : memref<128x384xbf16, #tpu.memory_space<vmem>>, vector<128x384xbf16>
    %c1 = arith.constant 1 : index
    %c0_12 = arith.constant 0 : index
    %15 = vector.load %arg5[%c1, %c0_12] : memref<2x384xf32, #tpu.memory_space<vmem>>, vector<1x128xf32>
    %c0_13 = arith.constant 0 : index
    %c0_14 = arith.constant 0 : index
    %16 = vector.load %arg11[%c0_13, %c0_14] : memref<16x128xf32, #tpu.memory_space<vmem>>, vector<16x128xf32>
    %c0_i32_15 = arith.constant 0 : i32
    %c16_i32 = arith.constant 16 : i32
    %17 = arith.muli %c0_i32_15, %c16_i32 : i32
    %18 = tpu.assume_multiple %17, 16 : i32
    %19 = arith.index_cast %18 : i32 to index
    %c0_16 = arith.constant 0 : index
    %20 = vector.load %arg14[%19, %c0_16] : memref<64x384xf32, #tpu.memory_space<vmem>>, vector<16x384xf32>
    %21 = arith.truncf %16 : vector<16x128xf32> to vector<16x128xbf16>
    %cst_17 = arith.constant dense<0.000000e+00> : vector<16x384xf32>
    %22 = tpu.matmul %21, %14, %cst_17 {dimension_numbers = #tpu.dot_dimension_numbers<[1], [0], [0], [1], [0, 0, 1, 1], [], []>} : vector<16x128xbf16>, vector<128x384xbf16>, vector<16x384xf32> -> vector<16x384xf32>
    %23 = vector.extract_strided_slice %20 {offsets = [0, 0], sizes = [16, 128], strides = [1, 1]} : vector<16x384xf32> to vector<16x128xf32>
    %24 = vector.extract_strided_slice %22 {offsets = [0, 0], sizes = [16, 128], strides = [1, 1]} : vector<16x384xf32> to vector<16x128xf32>
    %25 = arith.addf %23, %24 : vector<16x128xf32>
    %26 = arith.negf %25 : vector<16x128xf32>
    %27 = math.exp %26 : vector<16x128xf32>
    %cst_18 = arith.constant 1.000000e+00 : f32
    %28 = vector.broadcast %cst_18 : f32 to vector<16x128xf32>
    %29 = arith.addf %28, %27 : vector<16x128xf32>
    %30 = arith.divf %28, %29 : vector<16x128xf32>
    %31 = vector.extract_strided_slice %20 {offsets = [0, 128], sizes = [16, 128], strides = [1, 1]} : vector<16x384xf32> to vector<16x128xf32>
    %32 = vector.extract_strided_slice %22 {offsets = [0, 128], sizes = [16, 128], strides = [1, 1]} : vector<16x384xf32> to vector<16x128xf32>
    %33 = arith.addf %31, %32 : vector<16x128xf32>
    %34 = arith.negf %33 : vector<16x128xf32>
    %35 = math.exp %34 : vector<16x128xf32>
    %cst_19 = arith.constant 1.000000e+00 : f32
    %36 = vector.broadcast %cst_19 : f32 to vector<16x128xf32>
    %37 = arith.addf %36, %35 : vector<16x128xf32>
    %38 = arith.divf %36, %37 : vector<16x128xf32>
    %39 = vector.extract_strided_slice %20 {offsets = [0, 256], sizes = [16, 128], strides = [1, 1]} : vector<16x384xf32> to vector<16x128xf32>
    %40 = vector.extract_strided_slice %22 {offsets = [0, 256], sizes = [16, 128], strides = [1, 1]} : vector<16x384xf32> to vector<16x128xf32>
    %41 = vector.broadcast %15 : vector<1x128xf32> to vector<16x128xf32>
    %42 = arith.addf %40, %41 : vector<16x128xf32>
    %43 = arith.mulf %30, %42 : vector<16x128xf32>
    %44 = arith.addf %39, %43 : vector<16x128xf32>
    %45 = math.tanh %44 : vector<16x128xf32>
    %46 = arith.subf %16, %45 : vector<16x128xf32>
    %47 = arith.mulf %38, %46 : vector<16x128xf32>
    %48 = arith.addf %45, %47 : vector<16x128xf32>
    %49 = vector.broadcast %c0_i32_15 : i32 to vector<16x1xi32>
    %50 = arith.cmpi slt, %49, %6 : vector<16x1xi32>
    %cst_20 = arith.constant 0.000000e+00 : f32
    %51 = vector.shape_cast %50 : vector<16x1xi1> to vector<16x1xi1>
    %52 = vector.broadcast %51 : vector<16x1xi1> to vector<16x128xi1>
    %53 = vector.broadcast %cst_20 : f32 to vector<16x128xf32>
    %54 = arith.select %52, %48, %53 : vector<16x128xi1>, vector<16x128xf32>
    %55 = arith.truncf %54 : vector<16x128xf32> to vector<16x128xbf16>
    %56 = arith.index_cast %18 : i32 to index
    %c0_21 = arith.constant 0 : index
    %57 = vector.load %arg13[%56, %c0_21] : memref<64x128xbf16, #tpu.memory_space<vmem>>, vector<16x128xbf16>
    tpu.vector_store %arg13[%56, %c0_21], %55 {strides = array<i32>} : memref<64x128xbf16, #tpu.memory_space<vmem>>, vector<16x128xbf16>,
    %58 = vector.shape_cast %50 : vector<16x1xi1> to vector<16x1xi1>
    %59 = vector.broadcast %58 : vector<16x1xi1> to vector<16x128xi1>
    %60 = arith.select %59, %48, %16 : vector<16x128xi1>, vector<16x128xf32>
    %c1_i32 = arith.constant 1 : i32
    %c16_i32_22 = arith.constant 16 : i32
    %61 = arith.muli %c1_i32, %c16_i32_22 : i32
    %62 = tpu.assume_multiple %61, 16 : i32
    %63 = arith.index_cast %62 : i32 to index
    %c0_23 = arith.constant 0 : index
    %64 = vector.load %arg14[%63, %c0_23] : memref<64x384xf32, #tpu.memory_space<vmem>>, vector<16x384xf32>
    %65 = arith.truncf %60 : vector<16x128xf32> to vector<16x128xbf16>
    %cst_24 = arith.constant dense<0.000000e+00> : vector<16x384xf32>
    %66 = tpu.matmul %65, %14, %cst_24 {dimension_numbers = #tpu.dot_dimension_numbers<[1], [0], [0], [1], [0, 0, 1, 1], [], []>} : vector<16x128xbf16>, vector<128x384xbf16>, vector<16x384xf32> -> vector<16x384xf32>
    %67 = vector.extract_strided_slice %64 {offsets = [0, 0], sizes = [16, 128], strides = [1, 1]} : vector<16x384xf32> to vector<16x128xf32>
    %68 = vector.extract_strided_slice %66 {offsets = [0, 0], sizes = [16, 128], strides = [1, 1]} : vector<16x384xf32> to vector<16x128xf32>
    %69 = arith.addf %67, %68 : vector<16x128xf32>
    %70 = arith.negf %69 : vector<16x128xf32>
    %71 = math.exp %70 : vector<16x128xf32>
    %cst_25 = arith.constant 1.000000e+00 : f32
    %72 = vector.broadcast %cst_25 : f32 to vector<16x128xf32>
    %73 = arith.addf %72, %71 : vector<16x128xf32>
    %74 = arith.divf %72, %73 : vector<16x128xf32>
    %75 = vector.extract_strided_slice %64 {offsets = [0, 128], sizes = [16, 128], strides = [1, 1]} : vector<16x384xf32> to vector<16x128xf32>
    %76 = vector.extract_strided_slice %66 {offsets = [0, 128], sizes = [16, 128], strides = [1, 1]} : vector<16x384xf32> to vector<16x128xf32>
    %77 = arith.addf %75, %76 : vector<16x128xf32>
    %78 = arith.negf %77 : vector<16x128xf32>
    %79 = math.exp %78 : vector<16x128xf32>
    %cst_26 = arith.constant 1.000000e+00 : f32
    %80 = vector.broadcast %cst_26 : f32 to vector<16x128xf32>
    %81 = arith.addf %80, %79 : vector<16x128xf32>
    %82 = arith.divf %80, %81 : vector<16x128xf32>
    %83 = vector.extract_strided_slice %64 {offsets = [0, 256], sizes = [16, 128], strides = [1, 1]} : vector<16x384xf32> to vector<16x128xf32>
    %84 = vector.extract_strided_slice %66 {offsets = [0, 256], sizes = [16, 128], strides = [1, 1]} : vector<16x384xf32> to vector<16x128xf32>
    %85 = vector.broadcast %15 : vector<1x128xf32> to vector<16x128xf32>
    %86 = arith.addf %84, %85 : vector<16x128xf32>
    %87 = arith.mulf %74, %86 : vector<16x128xf32>
    %88 = arith.addf %83, %87 : vector<16x128xf32>
    %89 = math.tanh %88 : vector<16x128xf32>
    %90 = arith.subf %60, %89 : vector<16x128xf32>
    %91 = arith.mulf %82, %90 : vector<16x128xf32>
    %92 = arith.addf %89, %91 : vector<16x128xf32>
    %93 = vector.broadcast %c1_i32 : i32 to vector<16x1xi32>
    %94 = arith.cmpi slt, %93, %6 : vector<16x1xi32>
    %cst_27 = arith.constant 0.000000e+00 : f32
    %95 = vector.shape_cast %94 : vector<16x1xi1> to vector<16x1xi1>
    %96 = vector.broadcast %95 : vector<16x1xi1> to vector<16x128xi1>
    %97 = vector.broadcast %cst_27 : f32 to vector<16x128xf32>
    %98 = arith.select %96, %92, %97 : vector<16x128xi1>, vector<16x128xf32>
    %99 = arith.truncf %98 : vector<16x128xf32> to vector<16x128xbf16>
    %100 = arith.index_cast %62 : i32 to index
    %c0_28 = arith.constant 0 : index
    %101 = vector.load %arg13[%100, %c0_28] : memref<64x128xbf16, #tpu.memory_space<vmem>>, vector<16x128xbf16>
    tpu.vector_store %arg13[%100, %c0_28], %99 {strides = array<i32>} : memref<64x128xbf16, #tpu.memory_space<vmem>>, vector<16x128xbf16>,
    %102 = vector.shape_cast %94 : vector<16x1xi1> to vector<16x1xi1>
    %103 = vector.broadcast %102 : vector<16x1xi1> to vector<16x128xi1>
    %104 = arith.select %103, %92, %60 : vector<16x128xi1>, vector<16x128xf32>
    %c2_i32 = arith.constant 2 : i32
    %c16_i32_29 = arith.constant 16 : i32
    %105 = arith.muli %c2_i32, %c16_i32_29 : i32
    %106 = tpu.assume_multiple %105, 16 : i32
    %107 = arith.index_cast %106 : i32 to index
    %c0_30 = arith.constant 0 : index
    %108 = vector.load %arg14[%107, %c0_30] : memref<64x384xf32, #tpu.memory_space<vmem>>, vector<16x384xf32>
    %109 = arith.truncf %104 : vector<16x128xf32> to vector<16x128xbf16>
    %cst_31 = arith.constant dense<0.000000e+00> : vector<16x384xf32>
    %110 = tpu.matmul %109, %14, %cst_31 {dimension_numbers = #tpu.dot_dimension_numbers<[1], [0], [0], [1], [0, 0, 1, 1], [], []>} : vector<16x128xbf16>, vector<128x384xbf16>, vector<16x384xf32> -> vector<16x384xf32>
    %111 = vector.extract_strided_slice %108 {offsets = [0, 0], sizes = [16, 128], strides = [1, 1]} : vector<16x384xf32> to vector<16x128xf32>
    %112 = vector.extract_strided_slice %110 {offsets = [0, 0], sizes = [16, 128], strides = [1, 1]} : vector<16x384xf32> to vector<16x128xf32>
    %113 = arith.addf %111, %112 : vector<16x128xf32>
    %114 = arith.negf %113 : vector<16x128xf32>
    %115 = math.exp %114 : vector<16x128xf32>
    %cst_32 = arith.constant 1.000000e+00 : f32
    %116 = vector.broadcast %cst_32 : f32 to vector<16x128xf32>
    %117 = arith.addf %116, %115 : vector<16x128xf32>
    %118 = arith.divf %116, %117 : vector<16x128xf32>
    %119 = vector.extract_strided_slice %108 {offsets = [0, 128], sizes = [16, 128], strides = [1, 1]} : vector<16x384xf32> to vector<16x128xf32>
    %120 = vector.extract_strided_slice %110 {offsets = [0, 128], sizes = [16, 128], strides = [1, 1]} : vector<16x384xf32> to vector<16x128xf32>
    %121 = arith.addf %119, %120 : vector<16x128xf32>
    %122 = arith.negf %121 : vector<16x128xf32>
    %123 = math.exp %122 : vector<16x128xf32>
    %cst_33 = arith.constant 1.000000e+00 : f32
    %124 = vector.broadcast %cst_33 : f32 to vector<16x128xf32>
    %125 = arith.addf %124, %123 : vector<16x128xf32>
    %126 = arith.divf %124, %125 : vector<16x128xf32>
    %127 = vector.extract_strided_slice %108 {offsets = [0, 256], sizes = [16, 128], strides = [1, 1]} : vector<16x384xf32> to vector<16x128xf32>
    %128 = vector.extract_strided_slice %110 {offsets = [0, 256], sizes = [16, 128], strides = [1, 1]} : vector<16x384xf32> to vector<16x128xf32>
    %129 = vector.broadcast %15 : vector<1x128xf32> to vector<16x128xf32>
    %130 = arith.addf %128, %129 : vector<16x128xf32>
    %131 = arith.mulf %118, %130 : vector<16x128xf32>
    %132 = arith.addf %127, %131 : vector<16x128xf32>
    %133 = math.tanh %132 : vector<16x128xf32>
    %134 = arith.subf %104, %133 : vector<16x128xf32>
    %135 = arith.mulf %126, %134 : vector<16x128xf32>
    %136 = arith.addf %133, %135 : vector<16x128xf32>
    %137 = vector.broadcast %c2_i32 : i32 to vector<16x1xi32>
    %138 = arith.cmpi slt, %137, %6 : vector<16x1xi32>
    %cst_34 = arith.constant 0.000000e+00 : f32
    %139 = vector.shape_cast %138 : vector<16x1xi1> to vector<16x1xi1>
    %140 = vector.broadcast %139 : vector<16x1xi1> to vector<16x128xi1>
    %141 = vector.broadcast %cst_34 : f32 to vector<16x128xf32>
    %142 = arith.select %140, %136, %141 : vector<16x128xi1>, vector<16x128xf32>
    %143 = arith.truncf %142 : vector<16x128xf32> to vector<16x128xbf16>
    %144 = arith.index_cast %106 : i32 to index
    %c0_35 = arith.constant 0 : index
    %145 = vector.load %arg13[%144, %c0_35] : memref<64x128xbf16, #tpu.memory_space<vmem>>, vector<16x128xbf16>
    tpu.vector_store %arg13[%144, %c0_35], %143 {strides = array<i32>} : memref<64x128xbf16, #tpu.memory_space<vmem>>, vector<16x128xbf16>,
    %146 = vector.shape_cast %138 : vector<16x1xi1> to vector<16x1xi1>
    %147 = vector.broadcast %146 : vector<16x1xi1> to vector<16x128xi1>
    %148 = arith.select %147, %136, %104 : vector<16x128xi1>, vector<16x128xf32>
    %c3_i32 = arith.constant 3 : i32
    %c16_i32_36 = arith.constant 16 : i32
    %149 = arith.muli %c3_i32, %c16_i32_36 : i32
    %150 = tpu.assume_multiple %149, 16 : i32
    %151 = arith.index_cast %150 : i32 to index
    %c0_37 = arith.constant 0 : index
    %152 = vector.load %arg14[%151, %c0_37] : memref<64x384xf32, #tpu.memory_space<vmem>>, vector<16x384xf32>
    %153 = arith.truncf %148 : vector<16x128xf32> to vector<16x128xbf16>
    %cst_38 = arith.constant dense<0.000000e+00> : vector<16x384xf32>
    %154 = tpu.matmul %153, %14, %cst_38 {dimension_numbers = #tpu.dot_dimension_numbers<[1], [0], [0], [1], [0, 0, 1, 1], [], []>} : vector<16x128xbf16>, vector<128x384xbf16>, vector<16x384xf32> -> vector<16x384xf32>
    %155 = vector.extract_strided_slice %152 {offsets = [0, 0], sizes = [16, 128], strides = [1, 1]} : vector<16x384xf32> to vector<16x128xf32>
    %156 = vector.extract_strided_slice %154 {offsets = [0, 0], sizes = [16, 128], strides = [1, 1]} : vector<16x384xf32> to vector<16x128xf32>
    %157 = arith.addf %155, %156 : vector<16x128xf32>
    %158 = arith.negf %157 : vector<16x128xf32>
    %159 = math.exp %158 : vector<16x128xf32>
    %cst_39 = arith.constant 1.000000e+00 : f32
    %160 = vector.broadcast %cst_39 : f32 to vector<16x128xf32>
    %161 = arith.addf %160, %159 : vector<16x128xf32>
    %162 = arith.divf %160, %161 : vector<16x128xf32>
    %163 = vector.extract_strided_slice %152 {offsets = [0, 128], sizes = [16, 128], strides = [1, 1]} : vector<16x384xf32> to vector<16x128xf32>
    %164 = vector.extract_strided_slice %154 {offsets = [0, 128], sizes = [16, 128], strides = [1, 1]} : vector<16x384xf32> to vector<16x128xf32>
    %165 = arith.addf %163, %164 : vector<16x128xf32>
    %166 = arith.negf %165 : vector<16x128xf32>
    %167 = math.exp %166 : vector<16x128xf32>
    %cst_40 = arith.constant 1.000000e+00 : f32
    %168 = vector.broadcast %cst_40 : f32 to vector<16x128xf32>
    %169 = arith.addf %168, %167 : vector<16x128xf32>
    %170 = arith.divf %168, %169 : vector<16x128xf32>
    %171 = vector.extract_strided_slice %152 {offsets = [0, 256], sizes = [16, 128], strides = [1, 1]} : vector<16x384xf32> to vector<16x128xf32>
    %172 = vector.extract_strided_slice %154 {offsets = [0, 256], sizes = [16, 128], strides = [1, 1]} : vector<16x384xf32> to vector<16x128xf32>
    %173 = vector.broadcast %15 : vector<1x128xf32> to vector<16x128xf32>
    %174 = arith.addf %172, %173 : vector<16x128xf32>
    %175 = arith.mulf %162, %174 : vector<16x128xf32>
    %176 = arith.addf %171, %175 : vector<16x128xf32>
    %177 = math.tanh %176 : vector<16x128xf32>
    %178 = arith.subf %148, %177 : vector<16x128xf32>
    %179 = arith.mulf %170, %178 : vector<16x128xf32>
    %180 = arith.addf %177, %179 : vector<16x128xf32>
    %181 = vector.broadcast %c3_i32 : i32 to vector<16x1xi32>
    %182 = arith.cmpi slt, %181, %6 : vector<16x1xi32>
    %cst_41 = arith.constant 0.000000e+00 : f32
    %183 = vector.shape_cast %182 : vector<16x1xi1> to vector<16x1xi1>
    %184 = vector.broadcast %183 : vector<16x1xi1> to vector<16x128xi1>
    %185 = vector.broadcast %cst_41 : f32 to vector<16x128xf32>
    %186 = arith.select %184, %180, %185 : vector<16x128xi1>, vector<16x128xf32>
    %187 = arith.truncf %186 : vector<16x128xf32> to vector<16x128xbf16>
    %188 = arith.index_cast %150 : i32 to index
    %c0_42 = arith.constant 0 : index
    %189 = vector.load %arg13[%188, %c0_42] : memref<64x128xbf16, #tpu.memory_space<vmem>>, vector<16x128xbf16>
    tpu.vector_store %arg13[%188, %c0_42], %187 {strides = array<i32>} : memref<64x128xbf16, #tpu.memory_space<vmem>>, vector<16x128xbf16>,
    %190 = vector.shape_cast %182 : vector<16x1xi1> to vector<16x1xi1>
    %191 = vector.broadcast %190 : vector<16x1xi1> to vector<16x128xi1>
    %192 = arith.select %191, %180, %148 : vector<16x128xi1>, vector<16x128xf32>
    %c4_i32_43 = arith.constant 4 : i32
    %c0_44 = arith.constant 0 : index
    %c0_45 = arith.constant 0 : index
    %193 = vector.load %arg11[%c0_44, %c0_45] : memref<16x128xf32, #tpu.memory_space<vmem>>, vector<16x128xf32>
    tpu.vector_store %arg11[%c0_44, %c0_45], %192 {strides = array<i32>} : memref<16x128xf32, #tpu.memory_space<vmem>>, vector<16x128xf32>,
    %c0_46 = arith.constant 0 : index
    %c0_47 = arith.constant 0 : index
    %194 = vector.load %arg13[%c0_46, %c0_47] : memref<64x128xbf16, #tpu.memory_space<vmem>>, vector<64x128xbf16>
    %c0_48 = arith.constant 0 : index
    %c0_49 = arith.constant 0 : index
    %195 = vector.load %arg6[%c0_48, %c0_49] : memref<128x384xbf16, #tpu.memory_space<vmem>>, vector<128x384xbf16>
    %cst_50 = arith.constant dense<0.000000e+00> : vector<64x384xf32>
    %196 = tpu.matmul %194, %195, %cst_50 {dimension_numbers = #tpu.dot_dimension_numbers<[1], [0], [0], [1], [0, 0, 1, 1], [], []>} : vector<64x128xbf16>, vector<128x384xbf16>, vector<64x384xf32> -> vector<64x384xf32>
    %c0_51 = arith.constant 0 : index
    %c0_52 = arith.constant 0 : index
    %197 = vector.load %arg8[%c0_51, %c0_52] : memref<2x384xf32, #tpu.memory_space<vmem>>, vector<1x384xf32>
    %198 = vector.broadcast %197 : vector<1x384xf32> to vector<64x384xf32>
    %199 = arith.addf %196, %198 : vector<64x384xf32>
    %c0_53 = arith.constant 0 : index
    %c0_54 = arith.constant 0 : index
    %200 = vector.load %arg14[%c0_53, %c0_54] : memref<64x384xf32, #tpu.memory_space<vmem>>, vector<64x384xf32>
    tpu.vector_store %arg14[%c0_53, %c0_54], %199 {strides = array<i32>} : memref<64x384xf32, #tpu.memory_space<vmem>>, vector<64x384xf32>,
    %c0_55 = arith.constant 0 : index
    %c0_56 = arith.constant 0 : index
    %201 = vector.load %arg7[%c0_55, %c0_56] : memref<128x384xbf16, #tpu.memory_space<vmem>>, vector<128x384xbf16>
    %c1_57 = arith.constant 1 : index
    %c0_58 = arith.constant 0 : index
    %202 = vector.load %arg8[%c1_57, %c0_58] : memref<2x384xf32, #tpu.memory_space<vmem>>, vector<1x128xf32>
    %c0_59 = arith.constant 0 : index
    %c0_60 = arith.constant 0 : index
    %203 = vector.load %arg12[%c0_59, %c0_60] : memref<16x128xf32, #tpu.memory_space<vmem>>, vector<16x128xf32>
    %c0_i32_61 = arith.constant 0 : i32
    %c16_i32_62 = arith.constant 16 : i32
    %204 = arith.muli %c0_i32_61, %c16_i32_62 : i32
    %205 = tpu.assume_multiple %204, 16 : i32
    %206 = arith.index_cast %205 : i32 to index
    %c0_63 = arith.constant 0 : index
    %207 = vector.load %arg14[%206, %c0_63] : memref<64x384xf32, #tpu.memory_space<vmem>>, vector<16x384xf32>
    %208 = arith.truncf %203 : vector<16x128xf32> to vector<16x128xbf16>
    %cst_64 = arith.constant dense<0.000000e+00> : vector<16x384xf32>
    %209 = tpu.matmul %208, %201, %cst_64 {dimension_numbers = #tpu.dot_dimension_numbers<[1], [0], [0], [1], [0, 0, 1, 1], [], []>} : vector<16x128xbf16>, vector<128x384xbf16>, vector<16x384xf32> -> vector<16x384xf32>
    %210 = vector.extract_strided_slice %207 {offsets = [0, 0], sizes = [16, 128], strides = [1, 1]} : vector<16x384xf32> to vector<16x128xf32>
    %211 = vector.extract_strided_slice %209 {offsets = [0, 0], sizes = [16, 128], strides = [1, 1]} : vector<16x384xf32> to vector<16x128xf32>
    %212 = arith.addf %210, %211 : vector<16x128xf32>
    %213 = arith.negf %212 : vector<16x128xf32>
    %214 = math.exp %213 : vector<16x128xf32>
    %cst_65 = arith.constant 1.000000e+00 : f32
    %215 = vector.broadcast %cst_65 : f32 to vector<16x128xf32>
    %216 = arith.addf %215, %214 : vector<16x128xf32>
    %217 = arith.divf %215, %216 : vector<16x128xf32>
    %218 = vector.extract_strided_slice %207 {offsets = [0, 128], sizes = [16, 128], strides = [1, 1]} : vector<16x384xf32> to vector<16x128xf32>
    %219 = vector.extract_strided_slice %209 {offsets = [0, 128], sizes = [16, 128], strides = [1, 1]} : vector<16x384xf32> to vector<16x128xf32>
    %220 = arith.addf %218, %219 : vector<16x128xf32>
    %221 = arith.negf %220 : vector<16x128xf32>
    %222 = math.exp %221 : vector<16x128xf32>
    %cst_66 = arith.constant 1.000000e+00 : f32
    %223 = vector.broadcast %cst_66 : f32 to vector<16x128xf32>
    %224 = arith.addf %223, %222 : vector<16x128xf32>
    %225 = arith.divf %223, %224 : vector<16x128xf32>
    %226 = vector.extract_strided_slice %207 {offsets = [0, 256], sizes = [16, 128], strides = [1, 1]} : vector<16x384xf32> to vector<16x128xf32>
    %227 = vector.extract_strided_slice %209 {offsets = [0, 256], sizes = [16, 128], strides = [1, 1]} : vector<16x384xf32> to vector<16x128xf32>
    %228 = vector.broadcast %202 : vector<1x128xf32> to vector<16x128xf32>
    %229 = arith.addf %227, %228 : vector<16x128xf32>
    %230 = arith.mulf %217, %229 : vector<16x128xf32>
    %231 = arith.addf %226, %230 : vector<16x128xf32>
    %232 = math.tanh %231 : vector<16x128xf32>
    %233 = arith.subf %203, %232 : vector<16x128xf32>
    %234 = arith.mulf %225, %233 : vector<16x128xf32>
    %235 = arith.addf %232, %234 : vector<16x128xf32>
    %236 = vector.broadcast %c0_i32_61 : i32 to vector<16x1xi32>
    %237 = arith.cmpi slt, %236, %6 : vector<16x1xi32>
    %cst_67 = arith.constant 0.000000e+00 : f32
    %238 = vector.shape_cast %237 : vector<16x1xi1> to vector<16x1xi1>
    %239 = vector.broadcast %238 : vector<16x1xi1> to vector<16x128xi1>
    %240 = vector.broadcast %cst_67 : f32 to vector<16x128xf32>
    %241 = arith.select %239, %235, %240 : vector<16x128xi1>, vector<16x128xf32>
    %242 = arith.truncf %241 : vector<16x128xf32> to vector<16x128xbf16>
    %243 = arith.index_cast %205 : i32 to index
    %c0_68 = arith.constant 0 : index
    %244 = vector.load %arg9[%243, %c0_68] : memref<64x128xbf16, #tpu.memory_space<vmem>>, vector<16x128xbf16>
    tpu.vector_store %arg9[%243, %c0_68], %242 {strides = array<i32>} : memref<64x128xbf16, #tpu.memory_space<vmem>>, vector<16x128xbf16>,
    %245 = vector.shape_cast %237 : vector<16x1xi1> to vector<16x1xi1>
    %246 = vector.broadcast %245 : vector<16x1xi1> to vector<16x128xi1>
    %247 = arith.select %246, %235, %203 : vector<16x128xi1>, vector<16x128xf32>
    %c1_i32_69 = arith.constant 1 : i32
    %c16_i32_70 = arith.constant 16 : i32
    %248 = arith.muli %c1_i32_69, %c16_i32_70 : i32
    %249 = tpu.assume_multiple %248, 16 : i32
    %250 = arith.index_cast %249 : i32 to index
    %c0_71 = arith.constant 0 : index
    %251 = vector.load %arg14[%250, %c0_71] : memref<64x384xf32, #tpu.memory_space<vmem>>, vector<16x384xf32>
    %252 = arith.truncf %247 : vector<16x128xf32> to vector<16x128xbf16>
    %cst_72 = arith.constant dense<0.000000e+00> : vector<16x384xf32>
    %253 = tpu.matmul %252, %201, %cst_72 {dimension_numbers = #tpu.dot_dimension_numbers<[1], [0], [0], [1], [0, 0, 1, 1], [], []>} : vector<16x128xbf16>, vector<128x384xbf16>, vector<16x384xf32> -> vector<16x384xf32>
    %254 = vector.extract_strided_slice %251 {offsets = [0, 0], sizes = [16, 128], strides = [1, 1]} : vector<16x384xf32> to vector<16x128xf32>
    %255 = vector.extract_strided_slice %253 {offsets = [0, 0], sizes = [16, 128], strides = [1, 1]} : vector<16x384xf32> to vector<16x128xf32>
    %256 = arith.addf %254, %255 : vector<16x128xf32>
    %257 = arith.negf %256 : vector<16x128xf32>
    %258 = math.exp %257 : vector<16x128xf32>
    %cst_73 = arith.constant 1.000000e+00 : f32
    %259 = vector.broadcast %cst_73 : f32 to vector<16x128xf32>
    %260 = arith.addf %259, %258 : vector<16x128xf32>
    %261 = arith.divf %259, %260 : vector<16x128xf32>
    %262 = vector.extract_strided_slice %251 {offsets = [0, 128], sizes = [16, 128], strides = [1, 1]} : vector<16x384xf32> to vector<16x128xf32>
    %263 = vector.extract_strided_slice %253 {offsets = [0, 128], sizes = [16, 128], strides = [1, 1]} : vector<16x384xf32> to vector<16x128xf32>
    %264 = arith.addf %262, %263 : vector<16x128xf32>
    %265 = arith.negf %264 : vector<16x128xf32>
    %266 = math.exp %265 : vector<16x128xf32>
    %cst_74 = arith.constant 1.000000e+00 : f32
    %267 = vector.broadcast %cst_74 : f32 to vector<16x128xf32>
    %268 = arith.addf %267, %266 : vector<16x128xf32>
    %269 = arith.divf %267, %268 : vector<16x128xf32>
    %270 = vector.extract_strided_slice %251 {offsets = [0, 256], sizes = [16, 128], strides = [1, 1]} : vector<16x384xf32> to vector<16x128xf32>
    %271 = vector.extract_strided_slice %253 {offsets = [0, 256], sizes = [16, 128], strides = [1, 1]} : vector<16x384xf32> to vector<16x128xf32>
    %272 = vector.broadcast %202 : vector<1x128xf32> to vector<16x128xf32>
    %273 = arith.addf %271, %272 : vector<16x128xf32>
    %274 = arith.mulf %261, %273 : vector<16x128xf32>
    %275 = arith.addf %270, %274 : vector<16x128xf32>
    %276 = math.tanh %275 : vector<16x128xf32>
    %277 = arith.subf %247, %276 : vector<16x128xf32>
    %278 = arith.mulf %269, %277 : vector<16x128xf32>
    %279 = arith.addf %276, %278 : vector<16x128xf32>
    %280 = vector.broadcast %c1_i32_69 : i32 to vector<16x1xi32>
    %281 = arith.cmpi slt, %280, %6 : vector<16x1xi32>
    %cst_75 = arith.constant 0.000000e+00 : f32
    %282 = vector.shape_cast %281 : vector<16x1xi1> to vector<16x1xi1>
    %283 = vector.broadcast %282 : vector<16x1xi1> to vector<16x128xi1>
    %284 = vector.broadcast %cst_75 : f32 to vector<16x128xf32>
    %285 = arith.select %283, %279, %284 : vector<16x128xi1>, vector<16x128xf32>
    %286 = arith.truncf %285 : vector<16x128xf32> to vector<16x128xbf16>
    %287 = arith.index_cast %249 : i32 to index
    %c0_76 = arith.constant 0 : index
    %288 = vector.load %arg9[%287, %c0_76] : memref<64x128xbf16, #tpu.memory_space<vmem>>, vector<16x128xbf16>
    tpu.vector_store %arg9[%287, %c0_76], %286 {strides = array<i32>} : memref<64x128xbf16, #tpu.memory_space<vmem>>, vector<16x128xbf16>,
    %289 = vector.shape_cast %281 : vector<16x1xi1> to vector<16x1xi1>
    %290 = vector.broadcast %289 : vector<16x1xi1> to vector<16x128xi1>
    %291 = arith.select %290, %279, %247 : vector<16x128xi1>, vector<16x128xf32>
    %c2_i32_77 = arith.constant 2 : i32
    %c16_i32_78 = arith.constant 16 : i32
    %292 = arith.muli %c2_i32_77, %c16_i32_78 : i32
    %293 = tpu.assume_multiple %292, 16 : i32
    %294 = arith.index_cast %293 : i32 to index
    %c0_79 = arith.constant 0 : index
    %295 = vector.load %arg14[%294, %c0_79] : memref<64x384xf32, #tpu.memory_space<vmem>>, vector<16x384xf32>
    %296 = arith.truncf %291 : vector<16x128xf32> to vector<16x128xbf16>
    %cst_80 = arith.constant dense<0.000000e+00> : vector<16x384xf32>
    %297 = tpu.matmul %296, %201, %cst_80 {dimension_numbers = #tpu.dot_dimension_numbers<[1], [0], [0], [1], [0, 0, 1, 1], [], []>} : vector<16x128xbf16>, vector<128x384xbf16>, vector<16x384xf32> -> vector<16x384xf32>
    %298 = vector.extract_strided_slice %295 {offsets = [0, 0], sizes = [16, 128], strides = [1, 1]} : vector<16x384xf32> to vector<16x128xf32>
    %299 = vector.extract_strided_slice %297 {offsets = [0, 0], sizes = [16, 128], strides = [1, 1]} : vector<16x384xf32> to vector<16x128xf32>
    %300 = arith.addf %298, %299 : vector<16x128xf32>
    %301 = arith.negf %300 : vector<16x128xf32>
    %302 = math.exp %301 : vector<16x128xf32>
    %cst_81 = arith.constant 1.000000e+00 : f32
    %303 = vector.broadcast %cst_81 : f32 to vector<16x128xf32>
    %304 = arith.addf %303, %302 : vector<16x128xf32>
    %305 = arith.divf %303, %304 : vector<16x128xf32>
    %306 = vector.extract_strided_slice %295 {offsets = [0, 128], sizes = [16, 128], strides = [1, 1]} : vector<16x384xf32> to vector<16x128xf32>
    %307 = vector.extract_strided_slice %297 {offsets = [0, 128], sizes = [16, 128], strides = [1, 1]} : vector<16x384xf32> to vector<16x128xf32>
    %308 = arith.addf %306, %307 : vector<16x128xf32>
    %309 = arith.negf %308 : vector<16x128xf32>
    %310 = math.exp %309 : vector<16x128xf32>
    %cst_82 = arith.constant 1.000000e+00 : f32
    %311 = vector.broadcast %cst_82 : f32 to vector<16x128xf32>
    %312 = arith.addf %311, %310 : vector<16x128xf32>
    %313 = arith.divf %311, %312 : vector<16x128xf32>
    %314 = vector.extract_strided_slice %295 {offsets = [0, 256], sizes = [16, 128], strides = [1, 1]} : vector<16x384xf32> to vector<16x128xf32>
    %315 = vector.extract_strided_slice %297 {offsets = [0, 256], sizes = [16, 128], strides = [1, 1]} : vector<16x384xf32> to vector<16x128xf32>
    %316 = vector.broadcast %202 : vector<1x128xf32> to vector<16x128xf32>
    %317 = arith.addf %315, %316 : vector<16x128xf32>
    %318 = arith.mulf %305, %317 : vector<16x128xf32>
    %319 = arith.addf %314, %318 : vector<16x128xf32>
    %320 = math.tanh %319 : vector<16x128xf32>
    %321 = arith.subf %291, %320 : vector<16x128xf32>
    %322 = arith.mulf %313, %321 : vector<16x128xf32>
    %323 = arith.addf %320, %322 : vector<16x128xf32>
    %324 = vector.broadcast %c2_i32_77 : i32 to vector<16x1xi32>
    %325 = arith.cmpi slt, %324, %6 : vector<16x1xi32>
    %cst_83 = arith.constant 0.000000e+00 : f32
    %326 = vector.shape_cast %325 : vector<16x1xi1> to vector<16x1xi1>
    %327 = vector.broadcast %326 : vector<16x1xi1> to vector<16x128xi1>
    %328 = vector.broadcast %cst_83 : f32 to vector<16x128xf32>
    %329 = arith.select %327, %323, %328 : vector<16x128xi1>, vector<16x128xf32>
    %330 = arith.truncf %329 : vector<16x128xf32> to vector<16x128xbf16>
    %331 = arith.index_cast %293 : i32 to index
    %c0_84 = arith.constant 0 : index
    %332 = vector.load %arg9[%331, %c0_84] : memref<64x128xbf16, #tpu.memory_space<vmem>>, vector<16x128xbf16>
    tpu.vector_store %arg9[%331, %c0_84], %330 {strides = array<i32>} : memref<64x128xbf16, #tpu.memory_space<vmem>>, vector<16x128xbf16>,
    %333 = vector.shape_cast %325 : vector<16x1xi1> to vector<16x1xi1>
    %334 = vector.broadcast %333 : vector<16x1xi1> to vector<16x128xi1>
    %335 = arith.select %334, %323, %291 : vector<16x128xi1>, vector<16x128xf32>
    %c3_i32_85 = arith.constant 3 : i32
    %c16_i32_86 = arith.constant 16 : i32
    %336 = arith.muli %c3_i32_85, %c16_i32_86 : i32
    %337 = tpu.assume_multiple %336, 16 : i32
    %338 = arith.index_cast %337 : i32 to index
    %c0_87 = arith.constant 0 : index
    %339 = vector.load %arg14[%338, %c0_87] : memref<64x384xf32, #tpu.memory_space<vmem>>, vector<16x384xf32>
    %340 = arith.truncf %335 : vector<16x128xf32> to vector<16x128xbf16>
    %cst_88 = arith.constant dense<0.000000e+00> : vector<16x384xf32>
    %341 = tpu.matmul %340, %201, %cst_88 {dimension_numbers = #tpu.dot_dimension_numbers<[1], [0], [0], [1], [0, 0, 1, 1], [], []>} : vector<16x128xbf16>, vector<128x384xbf16>, vector<16x384xf32> -> vector<16x384xf32>
    %342 = vector.extract_strided_slice %339 {offsets = [0, 0], sizes = [16, 128], strides = [1, 1]} : vector<16x384xf32> to vector<16x128xf32>
    %343 = vector.extract_strided_slice %341 {offsets = [0, 0], sizes = [16, 128], strides = [1, 1]} : vector<16x384xf32> to vector<16x128xf32>
    %344 = arith.addf %342, %343 : vector<16x128xf32>
    %345 = arith.negf %344 : vector<16x128xf32>
    %346 = math.exp %345 : vector<16x128xf32>
    %cst_89 = arith.constant 1.000000e+00 : f32
    %347 = vector.broadcast %cst_89 : f32 to vector<16x128xf32>
    %348 = arith.addf %347, %346 : vector<16x128xf32>
    %349 = arith.divf %347, %348 : vector<16x128xf32>
    %350 = vector.extract_strided_slice %339 {offsets = [0, 128], sizes = [16, 128], strides = [1, 1]} : vector<16x384xf32> to vector<16x128xf32>
    %351 = vector.extract_strided_slice %341 {offsets = [0, 128], sizes = [16, 128], strides = [1, 1]} : vector<16x384xf32> to vector<16x128xf32>
    %352 = arith.addf %350, %351 : vector<16x128xf32>
    %353 = arith.negf %352 : vector<16x128xf32>
    %354 = math.exp %353 : vector<16x128xf32>
    %cst_90 = arith.constant 1.000000e+00 : f32
    %355 = vector.broadcast %cst_90 : f32 to vector<16x128xf32>
    %356 = arith.addf %355, %354 : vector<16x128xf32>
    %357 = arith.divf %355, %356 : vector<16x128xf32>
    %358 = vector.extract_strided_slice %339 {offsets = [0, 256], sizes = [16, 128], strides = [1, 1]} : vector<16x384xf32> to vector<16x128xf32>
    %359 = vector.extract_strided_slice %341 {offsets = [0, 256], sizes = [16, 128], strides = [1, 1]} : vector<16x384xf32> to vector<16x128xf32>
    %360 = vector.broadcast %202 : vector<1x128xf32> to vector<16x128xf32>
    %361 = arith.addf %359, %360 : vector<16x128xf32>
    %362 = arith.mulf %349, %361 : vector<16x128xf32>
    %363 = arith.addf %358, %362 : vector<16x128xf32>
    %364 = math.tanh %363 : vector<16x128xf32>
    %365 = arith.subf %335, %364 : vector<16x128xf32>
    %366 = arith.mulf %357, %365 : vector<16x128xf32>
    %367 = arith.addf %364, %366 : vector<16x128xf32>
    %368 = vector.broadcast %c3_i32_85 : i32 to vector<16x1xi32>
    %369 = arith.cmpi slt, %368, %6 : vector<16x1xi32>
    %cst_91 = arith.constant 0.000000e+00 : f32
    %370 = vector.shape_cast %369 : vector<16x1xi1> to vector<16x1xi1>
    %371 = vector.broadcast %370 : vector<16x1xi1> to vector<16x128xi1>
    %372 = vector.broadcast %cst_91 : f32 to vector<16x128xf32>
    %373 = arith.select %371, %367, %372 : vector<16x128xi1>, vector<16x128xf32>
    %374 = arith.truncf %373 : vector<16x128xf32> to vector<16x128xbf16>
    %375 = arith.index_cast %337 : i32 to index
    %c0_92 = arith.constant 0 : index
    %376 = vector.load %arg9[%375, %c0_92] : memref<64x128xbf16, #tpu.memory_space<vmem>>, vector<16x128xbf16>
    tpu.vector_store %arg9[%375, %c0_92], %374 {strides = array<i32>} : memref<64x128xbf16, #tpu.memory_space<vmem>>, vector<16x128xbf16>,
    %377 = vector.shape_cast %369 : vector<16x1xi1> to vector<16x1xi1>
    %378 = vector.broadcast %377 : vector<16x1xi1> to vector<16x128xi1>
    %379 = arith.select %378, %367, %335 : vector<16x128xi1>, vector<16x128xf32>
    %c4_i32_93 = arith.constant 4 : i32
    %c0_94 = arith.constant 0 : index
    %c0_95 = arith.constant 0 : index
    %380 = vector.load %arg12[%c0_94, %c0_95] : memref<16x128xf32, #tpu.memory_space<vmem>>, vector<16x128xf32>
    tpu.vector_store %arg12[%c0_94, %c0_95], %379 {strides = array<i32>} : memref<16x128xf32, #tpu.memory_space<vmem>>, vector<16x128xf32>,
    %c1_i32_96 = arith.constant 1 : i32
    %381 = arith.cmpi eq, %arg0, %c1_i32_96 : i32
    %382 = arith.extui %381 : i1 to i32
    %c0_i32_97 = arith.constant 0 : i32
    %383 = arith.cmpi ne, %382, %c0_i32_97 : i32
    scf.if %383 {
      %c0_98 = arith.constant 0 : index
      %c0_99 = arith.constant 0 : index
      %384 = vector.load %arg12[%c0_98, %c0_99] : memref<16x128xf32, #tpu.memory_space<vmem>>, vector<16x128xf32>
      %c0_100 = arith.constant 0 : index
      %c0_101 = arith.constant 0 : index
      %385 = vector.load %arg10[%c0_100, %c0_101] : memref<16x128xf32, #tpu.memory_space<vmem>>, vector<16x128xf32>
      tpu.vector_store %arg10[%c0_100, %c0_101], %384 {strides = array<i32>} : memref<16x128xf32, #tpu.memory_space<vmem>>, vector<16x128xf32>,
    } else {
    }
    return
  }
  func.func @transform_0(%arg0: i32) -> (i32, i32) {
    %c0_i32 = arith.constant 0 : i32
    %c0_i32_0 = arith.constant 0 : i32
    %c0_i32_1 = arith.constant 0 : i32
    return %c0_i32, %c0_i32_0 : i32, i32
  }
  func.func @transform_1(%arg0: i32) -> (i32, i32) {
    %c0_i32 = arith.constant 0 : i32
    %c0_i32_0 = arith.constant 0 : i32
    return %arg0, %c0_i32 : i32, i32
  }
  func.func @transform_2(%arg0: i32) -> (i32, i32) {
    %c0_i32 = arith.constant 0 : i32
    %c0_i32_0 = arith.constant 0 : i32
    %c0_i32_1 = arith.constant 0 : i32
    return %c0_i32, %c0_i32_0 : i32, i32
  }
  func.func @transform_3(%arg0: i32) -> (i32, i32) {
    %c0_i32 = arith.constant 0 : i32
    %c0_i32_0 = arith.constant 0 : i32
    %c0_i32_1 = arith.constant 0 : i32
    return %c0_i32, %c0_i32_0 : i32, i32
  }
  func.func @transform_4(%arg0: i32) -> (i32, i32) {
    %c0_i32 = arith.constant 0 : i32
    %c0_i32_0 = arith.constant 0 : i32
    %c0_i32_1 = arith.constant 0 : i32
    return %c0_i32, %c0_i32_0 : i32, i32
  }
  func.func @transform_5(%arg0: i32) -> (i32, i32) {
    %c0_i32 = arith.constant 0 : i32
    %c0_i32_0 = arith.constant 0 : i32
    %c0_i32_1 = arith.constant 0 : i32
    return %c0_i32, %c0_i32_0 : i32, i32
  }
  func.func @transform_6(%arg0: i32) -> (i32, i32) {
    %c0_i32 = arith.constant 0 : i32
    %c0_i32_0 = arith.constant 0 : i32
    %c0_i32_1 = arith.constant 0 : i32
    return %c0_i32, %c0_i32_0 : i32, i32
  }
  func.func @transform_7(%arg0: i32) -> (i32, i32) {
    %c0_i32 = arith.constant 0 : i32
    %c0_i32_0 = arith.constant 0 : i32
    %c0_i32_1 = arith.constant 0 : i32
    return %c0_i32, %c0_i32_0 : i32, i32
  }
  func.func @transform_8(%arg0: i32) -> (i32, i32) {
    %c0_i32 = arith.constant 0 : i32
    %c0_i32_0 = arith.constant 0 : i32
    return %arg0, %c0_i32 : i32, i32
  }
  func.func @transform_9(%arg0: i32) -> (i32, i32) {
    %c0_i32 = arith.constant 0 : i32
    %c0_i32_0 = arith.constant 0 : i32
    %c0_i32_1 = arith.constant 0 : i32
    return %c0_i32, %c0_i32_0 : i32, i32
  }
}

</mosaic_0001>

<bundles_post_ra>
// kernel: rels_model_forward.1
= control target key start
LH: loop header
LB: loop body
LE: loop exit
PB: predicated region body
PF: predicated region fallthrough
CT: control target
= control target key end

     0   :  { %15 = vsyncpa [#allocation7], 0  ;;  %s4590_s0 = inlined_call_operand.vmem [shape: s32[16,1], index: 0, kind: input, shape index: {}]   ;;  %s4591_s1 = inlined_call_operand.vmem [shape: bf16[128,32], index: 1, kind: input, shape index: {}]   ;;  %s4592_s2 = inlined_call_operand.vmem [shape: bf16[32,384], index: 2, kind: input, shape index: {}]   ;;  %s4593_s3 = inlined_call_operand.hbm [shape: bf16[128,384], index: 3, kind: input, shape index: {}]   ;;  %s4594_s4 = inlined_call_operand.vmem [shape: f32[2,384], index: 4, kind: input, shape index: {}]   ;;  %s4595_s5 = inlined_call_operand.hbm [shape: bf16[128,384], index: 5, kind: input, shape index: {}]   ;;  %s4596_s6 = inlined_call_operand.hbm [shape: bf16[128,384], index: 6, kind: input, shape index: {}]   ;;  %s4597_s7 = inlined_call_operand.vmem [shape: f32[2,384], index: 7, kind: input, shape index: {}]   ;;  %s4598_s8 = inlined_call_operand.vmem [shape: bf16[128,128], index: 8, kind: output, shape index: {0}]   ;;  %s4599_s9 = inlined_call_operand.vmem [shape: f32[16,128], index: 9, kind: output, shape index: {1}]  }
   0x1   :  { %16 = vsyncpa [#allocation9], 0  ;;  %s3685_s30 = smov 0  }
   0x2 LB: > { %s3691_s10 = sadd.s32 4294967295, %s3624_s30   ;;  %p2650_p0 = scmp.ge.s32.totalorder %s3624_s30, 1  ;;  %s3624_s30 = sphi %s3685_s30, %s22_s30  }
   0x3   : > { %p247_p1 = scmp.lt.s32.totalorder %s3624_s30, 3  ;;  %p4600_p3 = scmp.eq.s32.totalorder %s3691_s10, 0 }
   0x4   : > { %s3626_s12 = smov [#allocation8]   ;;  %s3627_s14 = smov [#allocation6]  }
   0x5   : > { %p3697_p4 = pnand %p2650_p0, %p247_p1  ;;  %s281_s13 = sshll.u32 %s3626_s12, 4  ;;  %s282_s13 = int_to_ptr.vmem [resolvable:$true] %s281_s13 }
   0x6   : > { %s265_s15 = sshll.u32 %s3627_s14, 4  ;;  %s3628_s17 = smov [#allocation10]   ;;  %s3709_s15 = int_to_ptr.vmem [resolvable:$true] %s265_s15 }
   0x7   : > { %s4606_s11 = scalar_select %p3697_p4, 1, 0 }
   0x8   : > { %p3223_p5 = pneg %p3697_p4  ;;  %s294_s18 = sshll.u32 %s3628_s17, 4  ;;  %s3711_s18 = int_to_ptr.vmem [resolvable:$true] %s294_s18 }
   0x9   : > { %s3526_s21 = scalar_lea.hbm %s4595_s5, 3072 }
   0xa   : > { %p3705_p6 = pnand %p4600_p3, %p3223_p5  ;;  %p3527_p7 = scmp.ne.s32.totalorder %s4595_s5, %s3526_s21 }
   0xb   : > { %p3533_p11 = scmp.lt.u32.totalorder %s3526_s21, %s4595_s5 }
   0xc   : > { %p3721_p8 = pneg %p3705_p6 }
   0xe   : > { %p3529_p9 = pnand %p3721_p8, %p3527_p7 }
  0x10   : > { %p3530_p10 = pneg %p3529_p9 }
  0x12   : > { %p3535_p12 = pnand %p3533_p11, %p3530_p10 }
  0x14   : > { %3538 = shalt.err (!%p3535_p12)
}
  0x15   : > { %s3539_s27 = scalar_lea.vmem %s282_s13, 3072  ;;  %p3547_p5 = scmp.lt.s32.totalorder %s282_s13, %s282_s13 }
  0x16   : > { %p3540_p13 = scmp.ne.s32.totalorder %s282_s13, %s3539_s27  ;;  %p3548_p2 = scmp.lt.s32.totalorder %s3539_s27, %s3539_s27 }
  0x18   : > { %p3542_p0 = pnand %p3540_p13, %p3721_p8  ;;  %p3549_p3 = por %p3548_p2, %p3547_p5 }
  0x1a   : > { %p3543_p1 = pneg %p3542_p0 }
  0x1c   : > { %p3550_p4 = pnand %p3549_p3, %p3543_p1 }
  0x1e   : > { %3553 = shalt.err (!%p3550_p4)
}
  0x1f   : > { %s3629_s28 = smov 192   ;;  %s3630_s29 = smov 12  }
  0x20   : > { %3229 = dma.hbm_to_vmem [thread:$0]  (!%p3705_p6), %s4595_s5, 3072, %s282_s13, [#allocation9], %s3629_s28, %s3629_s28, %s3630_s29  }
  0x21   : > { %s3554_s20 = scalar_lea.hbm %s4593_s3, 3072 }
  0x22   : > { %p3555_p2 = scmp.ne.s32.totalorder %s4593_s3, %s3554_s20  ;;  %p3561_p7 = scmp.lt.u32.totalorder %s3554_s20, %s4593_s3 }
  0x24   : > { %p3557_p3 = pnand %p3555_p2, %p3721_p8 }
  0x26   : > { %p3558_p4 = pneg %p3557_p3 }
  0x28   : > { %p3563_p9 = pnand %p3561_p7, %p3558_p4 }
  0x2a   : > { %3566 = shalt.err (!%p3563_p9)
}
  0x2b   : > { %s3567_s13 = scalar_lea.vmem %s3709_s15, 3072  ;;  %p3575_p13 = scmp.lt.s32.totalorder %s3709_s15, %s3709_s15 }
  0x2c   : > { %p3568_p10 = scmp.ne.s32.totalorder %s3709_s15, %s3567_s13  ;;  %p3576_p0 = scmp.lt.s32.totalorder %s3567_s13, %s3567_s13 }
  0x2e   : > { %p3570_p11 = pnand %p3568_p10, %p3721_p8  ;;  %p3577_p1 = por %p3576_p0, %p3575_p13 }
  0x30   : > { %p3571_p12 = pneg %p3570_p11 }
  0x32   : > { %p3578_p5 = pnand %p3577_p1, %p3571_p12 }
  0x34   : > { %3581 = shalt.err (!%p3578_p5)
}
  0x35   : > { %3226 = dma.hbm_to_vmem [thread:$0]  (!%p3705_p6), %s4593_s3, 3072, %s3709_s15, [#allocation7], %s3629_s28, %s3629_s28, %s3630_s29  }
  0x36   : > { %s3582_s17 = scalar_lea.hbm %s4596_s6, 3072 }
  0x37   : > { %p3583_p2 = scmp.ne.s32.totalorder %s4596_s6, %s3582_s17  ;;  %p3589_p7 = scmp.lt.u32.totalorder %s3582_s17, %s4596_s6 }
  0x39   : > { %p3585_p3 = pnand %p3583_p2, %p3721_p8 }
  0x3b   : > { %p3586_p4 = pneg %p3585_p3 }
  0x3d   : > { %p3591_p9 = pnand %p3589_p7, %p3586_p4 }
  0x3f   : > { %3594 = shalt.err (!%p3591_p9)
}
  0x40   : > { %s3595_s15 = scalar_lea.vmem %s3711_s18, 3072  ;;  %p3603_p13 = scmp.lt.s32.totalorder %s3711_s18, %s3711_s18 }
  0x41   : > { %p3596_p10 = scmp.ne.s32.totalorder %s3711_s18, %s3595_s15  ;;  %p3604_p0 = scmp.lt.s32.totalorder %s3595_s15, %s3595_s15 }
  0x43   : > { %p3598_p11 = pnand %p3596_p10, %p3721_p8  ;;  %p3605_p1 = por %p3604_p0, %p3603_p13 }
  0x45   : > { %p3599_p12 = pneg %p3598_p11 }
  0x47   : > { %p3606_p5 = pnand %p3605_p1, %p3599_p12 }
  0x49   : > { %3609 = shalt.err (!%p3606_p5)
}
  0x4a   : > { %3232 = dma.hbm_to_vmem [thread:$0]  (!%p3705_p6), %s4596_s6, 3072, %s3711_s18, [#allocation9], %s3629_s28, %s3629_s28, %s3630_s29  }
  0x4b   : > { %p4609_p2 = scmp.ne.s32.totalorder %s4606_s11, 0 }
  0x4c   : > { %p4610_p8 = scmp.eq.s32.totalorder (!%p4609_p2), %s3691_s10, 0 }
  0x4d   : > { %322 = sbr.rel (%p4609_p2) target bundleno = 2283 (0x8eb), region = 52 }
  0x54   : > { %3615 = dma.done.wait (%p4610_p8), [#allocation7], 3072   ;;  %p4611_p3 = pmov %p4610_p8 }
  0x56   : > { %3617 = vsyncadd (%p4611_p3), [#allocation7], 4294964224  ;;  %p4612_p4 = pmov %p4611_p3 }
  0x57   : > { %p4613_p7 = pmov %p4611_p3 }
  0x58   : > { %3619 = dma.done.wait (%p4612_p4), [#allocation9], 6144  }
  0x59   : > { %3621 = vsyncadd (%p4613_p7), [#allocation9], 4294961152  ;;  %s2659_s16 = sshll.u32 %s3691_s10, 3  ;;  %s2663_s24 = sshll.u32 %s3691_s10, 2 }
  0x5a   : > { %p367_p6 = scmp.lt.s32.totalorder %s2659_s16, 15  ;;  %p4614_p9 = scmp.ne.s32.totalorder %s3691_s10, 0 }
  0x5b   : > { %v3631_v0 = vmov (!%p4614_p9), 0.0  }
  0x5c   : > { %s4620_s16 = smov (!%p367_p6, %s2659_s16), 15  ;;  %383 = sbr.rel (%p4614_p9) target bundleno = 99 (0x63), region = 68 }
  0x5d   : > { %s2660_s11 = sshll.u32 %s4620_s16, 2  ;;  %384 = vst [vmem:[#allocation2] sm:$0xff] (!%p4614_p9), %v3631_v0  ;;  %385 = vst [vmem:[#allocation2 + $0x8] sm:$0xff] (!%p4614_p9), %v3631_v0 }
  0x5e   : > { %s3807_s29 = scalar_lea.vmem %s4591_s1, %s2660_s11  ;;  %s3812_s27 = scalar_lea.vmem %s4598_s8, %s2660_s11  ;;  %386 = vst [vmem:[#allocation3] sm:$0xff] (!%p4614_p9), %v3631_v0  ;;  %387 = vst [vmem:[#allocation3 + $0x8] sm:$0xff] (!%p4614_p9), %v3631_v0 }
  0x63 PF: > { %v3258_v1 = vld [vmem:[%s4592_s2 + $0x4] ss:$12 sps:$4 sm:$0xff]   ;;  %v3260_v2 = vld [vmem:[%s4592_s2] ss:$12 sps:$4 sm:$0xff]   ;;  %v4602_v3 = vmov 0   ;;  %vm478_vm0 = vcmask 261120   ;;  %v390_v28 = vstv %s2663_s24  ;;  %v411_v53 = vlaneseq }
  0x64   : > { %523 = vmatprep.mubr.bf16.mxu0 %v4602_v3  ;;  %3257 = vset.pattern.permute.xlu1 %v4602_v3  ;;  %v3261_v4 = vld [vmem:[%s4592_s2 + $0x1c] ss:$12 sps:$4 sm:$0xff]   ;;  %v3263_v5 = vld [vmem:[%s4592_s2 + $0x18] ss:$12 sps:$4 sm:$0xff]   ;;  %v3835_v8 = vld [vmem:[#allocation6] ss:$12 sps:$4 sm:$0xff]  }
  0x65   : > { %491 = vmatprep.subr.bf16.mxu0 %v3258_v1  ;;  %3256 = vset.pattern.permute.xlu0 %v4602_v3  ;;  %v3264_v6 = vld [vmem:[%s3807_s29] sm:$0xff]   ;;  %v3838_v9 = vld [vmem:[#allocation6 + $0x1c] ss:$12 sps:$4 sm:$0xff]   ;;  %v3859_v16 = vld [vmem:[#allocation6 + $0x4c] ss:$12 sps:$4 sm:$0xff]   ;;  %v4604_v21 = vmov 0.0  }
  0x66   : > { %492 = vmatpush1.bf16.msra.mxu0 %v3260_v2  ;;  %v3832_v7 = vld [vmem:[#allocation6 + $0x4] ss:$12 sps:$4 sm:$0xff]   ;;  %2955 = vmatprep.mubr.msk.bf16.mxu1 %vm478_vm0, %v3264_v6  ;;  %v3279_v11 = vld [vmem:[%s4592_s2 + $0x8] ss:$12 sps:$4 sm:$0xff]   ;;  %v3283_v14 = vld [vmem:[%s4592_s2 + $0x20] ss:$12 sps:$4 sm:$0xff]  }
  0x67   : > { %493 = vmatprep.subr.bf16.mxu0 %v3261_v4  ;;  %v3841_v10 = vld [vmem:[#allocation6 + $0x18] ss:$12 sps:$4 sm:$0xff]   ;;  %v3849_v12 = vld [vmem:[#allocation6 + $0x34] ss:$12 sps:$4 sm:$0xff]   ;;  %v3271_v13 = vld [vmem:[%s3807_s29 + $0x8] sm:$0xff]   ;;  %2951 = vmatprep.subr.bf16.mxu1 %v3279_v11  ;;  %vm3634_vm1 = vmmov 0  }
  0x68   : > { %2952 = vmatpush3.bf16.msra.mxu1 %v3279_v11  ;;  %v3856_v15 = vld [vmem:[#allocation6 + $0x30] ss:$12 sps:$4 sm:$0xff]   ;;  %v3861_v17 = vld [vmem:[#allocation6 + $0x48] ss:$12 sps:$4 sm:$0xff]   ;;  %v3875_v22 = vld [vmem:[#allocation6 + $0x20] ss:$12 sps:$4 sm:$0xff]  }
  0x69   : > { %2953 = vmatprep.subr.bf16.mxu1 %v3283_v14  ;;  %v3864_v18 = vld [vmem:[#allocation6 + $0x8] ss:$12 sps:$4 sm:$0xff]   ;;  %v3870_v20 = vld [vmem:[#allocation6 + $0x64] ss:$12 sps:$4 sm:$0xff]   ;;  %v3879_v23 = vld [vmem:[#allocation6 + $0x60] ss:$12 sps:$4 sm:$0xff]  }
  0x6a   : > { %494 = vmatpush1.bf16.msra.mxu0 %v3263_v5  ;;  %v3278_v19 = vld [vmem:[%s3807_s29 + $0x10] sm:$0xff]   ;;  %v3883_v24 = vld [vmem:[#allocation6 + $0x7c] ss:$12 sps:$4 sm:$0xff]   ;;  %v3885_v25 = vld [vmem:[#allocation6 + $0x78] ss:$12 sps:$4 sm:$0xff]   ;;  %v3994_v54 = vshrl.u32 %v411_v53, 7 }
  0x6b   : > { %826 = vmatprep.subr.bf16.mxu0 %v3832_v7  ;;  %v3287_v26 = vld [vmem:[%s3807_s29 + $0x18] sm:$0xff]   ;;  %v3896_v29 = vld [vmem:[#allocation6 + $0x94] ss:$12 sps:$4 sm:$0xff]   ;;  %v389_v32 = vld [vmem:[%s4590_s0 + $0x8] sm:$0xff]  ;;  %p2803_p10 = scmp.ne.s32.totalorder %s3691_s10, 1 }
  0x6c   : > { %2954 = vmatpush3.bf16.msra.mxu1 %v3283_v14  ;;  %v3890_v27 = vld [vmem:[#allocation6 + $0x38] ss:$12 sps:$4 sm:$0xff]   ;;  %v3900_v30 = vld [vmem:[#allocation6 + $0x50] ss:$12 sps:$4 sm:$0xff]   ;;  %v392_v35 = vsub.s32 %v389_v32, %v390_v28  ;;  %v3921_v39 = vld [vmem:[#allocation6 + $0xa8] ss:$12 sps:$4 sm:$0xff]  }
  0x6d   : > { %2675 = vmatmul.mubr.msk.bf16.vlgmr.msra.gmra.mrb[0].mxu0 %vm478_vm0, %v3264_v6  ;;  %2963 = vmatprep.subr.bf16.mxu1 %v4604_v21  ;;  %v388_v31 = vld [vmem:[%s4590_s0] sm:$0xff]  ;;  %v3908_v33 = vld [vmem:[#allocation6 + $0x90] ss:$12 sps:$4 sm:$0xff]   ;;  %v3917_v36 = vld [vmem:[#allocation6 + $0xac] ss:$12 sps:$4 sm:$0xff]   ;;  %v421_v55 = vsub.s32 2, %v3994_v54 }
  0x6e   : > { %827 = vmatpush1.bf16.msra.mxu0 %v3835_v8  ;;  %533 = vmatprep.mubr.bf16.mxu0 %v4602_v3  ;;  %v391_v34 = vsub.s32 %v388_v31, %v390_v28  ;;  %vm1111_vm4 = vcmp.gt.s32.totalorder %v392_v35, 1  ;;  %vm957_vm5 = vcmp.gt.s32.totalorder %v392_v35, 0  ;;  %v3923_v40 = vld [vmem:[#allocation2] sm:$0xff]  ;;  %v3925_v41 = vld [vmem:[#allocation2 + $0x8] sm:$0xff]  ;;  %vm1266_vm6 = vcmp.gt.s32.totalorder %v392_v35, 2 }
  0x6f   : > { %828 = vmatprep.subr.bf16.mxu0 %v3838_v9  ;;  %2956 = vmatmul.mubr.msk.bf16.vlgmr.msra.gmra.mrb[0].mxu1 %vm478_vm0, %v3271_v13  ;;  %v3929_v42 = vld [vmem:[#allocation6 + $0x68] ss:$12 sps:$4 sm:$0xff]   ;;  %v1113_v43 = vsel %vm1111_vm4, 1, %v4602_v3  ;;  %v959_v44 = vsel %vm957_vm5, 1, %v4602_v3  ;;  %v3937_v45 = vld [vmem:[#allocation6 + $0x80] ss:$12 sps:$4 sm:$0xff]   ;;  %v697_v46 = vpack.c.bf16 %v3925_v41, %v3923_v40 }
  0x70   : > { %2964 = vmatpush3.bf16.msra.mxu1 %v3864_v18  ;;  %2959 = vmatprep.mubr.msk.bf16.mxu1 %vm478_vm0, %v3278_v19  ;;  %vm1110_vm2 = vcmp.gt.s32.totalorder %v391_v34, 1  ;;  %vm956_vm3 = vcmp.gt.s32.totalorder %v391_v34, 0  ;;  %vm1265_vm7 = vcmp.gt.s32.totalorder %v391_v34, 2  ;;  %v1268_v47 = vsel %vm1266_vm6, 1, %v4602_v3  ;;  %v3946_v49 = vld [vmem:[#allocation6 + $0x98] ss:$12 sps:$4 sm:$0xff]  }
  0x71   : > { %2965 = vmatprep.subr.bf16.mxu1 %v4604_v21  ;;  %v1112_v37 = vsel %vm1110_vm2, 1, %v4602_v3  ;;  %v958_v38 = vsel %vm956_vm3, 1, %v4602_v3  ;;  %v1267_v48 = vsel %vm1265_vm7, 1, %v4602_v3  ;;  %vm1421_vm8 = vcmp.gt.s32.totalorder %v392_v35, 3  ;;  %v3954_v52 = vld [vmem:[#allocation6 + $0xb0] ss:$12 sps:$4 sm:$0xff]  }
  0x72   : > { %829 = vmatpush1.bf16.msra.mxu0 %v3841_v10  ;;  %1115 = vperm.xlu1 %3257, %v1112_v37   ;;  %vm1420_vm9 = vcmp.gt.s32.totalorder %v391_v34, 3  ;;  %v1423_v50 = vsel %vm1421_vm8, 1, %v4602_v3  ;;  %v409_v56 = vld [vmem:[%s4594_s4] ss:$2 sm:$0x7]  ;;  %v413_v14 = vsub.s32 0, %v3994_v54 }
  0x73   : > { %830 = vmatprep.subr.bf16.mxu0 %v3849_v12  ;;  %961 = vperm.xlu0 %3256, %v958_v38   ;;  %v1422_v51 = vsel %vm1420_vm9, 1, %v4602_v3  ;;  %v422_v57 = vrot.slane %v409_v56, %v421_v55  ;;  %v417_v31 = vsub.s32 1, %v3994_v54 }
  0x74   : > { %2966 = vmatpush3.bf16.msra.mxu1 %v3875_v22 }
  0x75   : > { %2676 = vmatmul.mubr.msk.bf16.gmra.mrb[4].mxu0 %vm478_vm0, %v3271_v13  ;;  %2967 = vmatprep.subr.bf16.mxu1 %v4604_v21 }
  0x76   : > { %831 = vmatpush1.bf16.msra.mxu0 %v3856_v15  ;;  %543 = vmatprep.mubr.bf16.mxu0 %v4602_v3 }
  0x77   : > { %832 = vmatprep.subr.bf16.mxu0 %v3859_v16  ;;  %2960 = vmatmul.mubr.msk.bf16.gmra.mrb[4].mxu1 %vm478_vm0, %v3287_v26 }
  0x78   : > { %2968 = vmatpush3.bf16.msra.mxu1 %v3890_v27  ;;  %2979 = vmatprep.mubr.msk.bf16.mxu1 %vm3634_vm1, %v4604_v21 }
  0x79   : > { %2969 = vmatprep.subr.bf16.mxu1 %v4604_v21  ;;  %1118 = vperm.xlu1 %3257, %v1113_v43   ;;  %v4024_v43 = vrot.slane %v409_v56, %v417_v31 }
  0x7a   : > { %833 = vmatpush1.bf16.msra.mxu0 %v3861_v17  ;;  %964 = vperm.xlu0 %3256, %v959_v44  }
  0x7b   : > { %834 = vmatprep.subr.bf16.mxu0 %v3870_v20 }
  0x7c   : > { %2970 = vmatpush3.bf16.msra.mxu1 %v3900_v30 }
  0x7d   : > { %2677 = vmatmul.mubr.msk.bf16.gmra.mrb[8].mxu0 %vm478_vm0, %v3278_v19  ;;  %2971 = vmatprep.subr.bf16.mxu1 %v4604_v21  ;;  %v4017_v19 = vrot.slane %v409_v56, %v413_v14  ;;  %v4031_v56 = vld [vmem:[%s4594_s4 + $0x1] ss:$0 sm:$0xff] }
  0x7e   : > { %835 = vmatpush1.bf16.msra.mxu0 %v3879_v23  ;;  %553 = vmatprep.mubr.bf16.mxu0 %v4602_v3 }
  0x7f   : > { %836 = vmatprep.subr.bf16.mxu0 %v3883_v24  ;;  %1273 = vperm.xlu1 %3257, %v1268_v47  }
  0x80   : > { %2972 = vmatpush3.bf16.msra.mxu1 %v3929_v42  ;;  %1270 = vperm.xlu0 %3256, %v1267_v48  }
  0x81   : > { %2973 = vmatprep.subr.bf16.mxu1 %v4604_v21 }
  0x82   : > { %837 = vmatpush1.bf16.msra.mxu0 %v3885_v25 }
  0x83   : > { %838 = vmatprep.subr.bf16.mxu0 %v3896_v29  ;;  %1428 = vperm.xlu1 %3257, %v1423_v50  }
  0x84   : > { %2974 = vmatpush3.bf16.msra.mxu1 %v3937_v45  ;;  %1425 = vperm.xlu0 %3256, %v1422_v51  }
  0x85   : > { %2678 = vmatmul.mubr.msk.bf16.gmra.mrb[12].mxu0 %vm478_vm0, %v3287_v26  ;;  %2975 = vmatprep.subr.bf16.mxu1 %v4604_v21 }
  0x86   : > { %839 = vmatpush1.bf16.msra.mxu0 %v3908_v33  ;;  %858 = vmatprep.mubr.bf16.mxu0 %v4602_v3 }
  0x87   : > { %840 = vmatprep.subr.bf16.mxu0 %v3917_v36 }
  0x88   : > { %2976 = vmatpush3.bf16.msra.mxu1 %v3946_v49 }
  0x89   : > { %2977 = vmatprep.subr.bf16.mxu1 %v4604_v21 }
  0x8a   : > { %841 = vmatpush1.bf16.msra.mxu0 %v3921_v39 }
  0x8b   : > { %984 = vmatprep.subr.bf16.mxu0 %v3832_v7 }
  0x8c   : > { %2978 = vmatpush3.bf16.msra.mxu1 %v3954_v52 }
  0x8d   : > { %859 = vmatmul.mubr.bf16.vlgmr.msra.gmra.mrb[0].mxu0 %v697_v46  ;;  %2983 = vmatprep.subr.bf16.mxu1 %v4604_v21 }
  0x8e   : > { %985 = vmatpush1.bf16.msra.mxu0 %v3835_v8  ;;  %1016 = vmatprep.mubr.bf16.mxu0 %v4602_v3 }
  0x8f   : > { %986 = vmatprep.subr.bf16.mxu0 %v3838_v9  ;;  %2980 = vmatmul.mubr.bf16.vlgmr.msra.gmra.mrb[8].mxu1 %v697_v46 }
  0x90   : > { %2984 = vmatpush3.bf16.msra.mxu1 %v3864_v18  ;;  %2999 = vmatprep.mubr.msk.bf16.mxu1 %vm3634_vm1, %v4604_v21 }
  0x91   : > { %2985 = vmatprep.subr.bf16.mxu1 %v4604_v21 }
  0x92   : > { %987 = vmatpush1.bf16.msra.mxu0 %v3841_v10 }
  0x93   : > { %988 = vmatprep.subr.bf16.mxu0 %v3849_v12 }
  0x94   : > { %2986 = vmatpush3.bf16.msra.mxu1 %v3875_v22 }
  0x95   : > { %2987 = vmatprep.subr.bf16.mxu1 %v4604_v21 }
  0x96   : > { %989 = vmatpush1.bf16.msra.mxu0 %v3856_v15 }
  0x97   : > { %990 = vmatprep.subr.bf16.mxu0 %v3859_v16 }
  0x98   : > { %2988 = vmatpush3.bf16.msra.mxu1 %v3890_v27 }
  0x99   : > { %2989 = vmatprep.subr.bf16.mxu1 %v4604_v21 }
  0x9a   : > { %991 = vmatpush1.bf16.msra.mxu0 %v3861_v17 }
  0x9b   : > { %992 = vmatprep.subr.bf16.mxu0 %v3870_v20 }
  0x9c   : > { %2990 = vmatpush3.bf16.msra.mxu1 %v3900_v30 }
  0x9d   : > { %2991 = vmatprep.subr.bf16.mxu1 %v4604_v21 }
  0x9e   : > { %993 = vmatpush1.bf16.msra.mxu0 %v3879_v23 }
  0x9f   : > { %994 = vmatprep.subr.bf16.mxu0 %v3883_v24 }
  0xa0   : > { %2992 = vmatpush3.bf16.msra.mxu1 %v3929_v42 }
  0xa1   : > { %2993 = vmatprep.subr.bf16.mxu1 %v4604_v21 }
  0xa2   : > { %995 = vmatpush1.bf16.msra.mxu0 %v3885_v25 }
  0xa3   : > { %996 = vmatprep.subr.bf16.mxu0 %v3896_v29 }
  0xa4   : > { %2994 = vmatpush3.bf16.msra.mxu1 %v3937_v45 }
  0xa5   : > { %2995 = vmatprep.subr.bf16.mxu1 %v4604_v21 }
  0xa6   : > { %997 = vmatpush1.bf16.msra.mxu0 %v3908_v33 }
  0xa7   : > { %998 = vmatprep.subr.bf16.mxu0 %v3917_v36 }
  0xa8   : > { %2996 = vmatpush3.bf16.msra.mxu1 %v3946_v49 }
  0xa9   : > { %2997 = vmatprep.subr.bf16.mxu1 %v4604_v21 }
  0xaa   : > { %999 = vmatpush1.bf16.msra.mxu0 %v3921_v39 }
  0xab   : > { %1139 = vmatprep.subr.bf16.mxu0 %v3832_v7 }
  0xac   : > { %2998 = vmatpush3.bf16.msra.mxu1 %v3954_v52 }
  0xad   : > { %3003 = vmatprep.subr.bf16.mxu1 %v4604_v21 }
 0x142   : > { %v2957_v58 = vpop.f32.mrb[0].mxu1 }
 0x143   : > { %v4002_v59 = vadd.f32 %v2957_v58, %v422_v57  ;;  %v598_v60 = vpop.f32.mrb[1].mxu1 }
 0x144   : > { %v2958_v61 = vpop.f32.mrb[2].mxu1 }
 0x145   : > { %v4004_v62 = vadd.f32 %v2958_v61, %v422_v57  ;;  %v601_v63 = vpop.f32.mrb[3].mxu1 }
 0x14a   : > { %v2961_v0 = vpop.f32.mrb[4].mxu1 }
 0x14b   : > { %v4006_v1 = vadd.f32 %v2961_v0, %v422_v57  ;;  %v614_v2 = vpop.f32.mrb[5].mxu1 }
 0x14c   : > { %v4008_v4 = vadd.f32 %v614_v2, %v422_v57  ;;  %v2962_v5 = vpop.f32.mrb[6].mxu1 }
 0x14d   : > { %v4010_v6 = vadd.f32 %v2962_v5, %v422_v57  ;;  %v617_v11 = vpop.f32.mrb[7].mxu1 }
 0x14e   : > { %v4012_v13 = vadd.f32 %v617_v11, %v422_v57 }
 0x160   : > { %v860_v26 = vpop.f32.mrb[0].mxu0 }
 0x161   : > { %v3147_v28 = vadd.f32 %v860_v26, %v4017_v19  ;;  %v862_v32 = vpop.f32.mrb[1].mxu0 }
 0x162   : > { %v864_v34 = vpop.f32.mrb[2].mxu0  ;;  %v3148_v46 = vadd.f32 %v862_v32, %v4024_v43  ;;  %v903_v48 = vpop.f32.mrb[8].mxu1 }
 0x163   : > { %v2707_v35 = vmul.f32 -1.442695, %v3147_v28  ;;  %v3149_v37 = vadd.f32 %v864_v34, %v4017_v19  ;;  %v866_v38 = vpop.f32.mrb[3].mxu0  ;;  %v2981_v50 = vpop.f32.mrb[9].mxu1  ;;  %v942_v26 = vadd.f32 %v4031_v56, %v903_v48 }
 0x164   : > { %v3150_v47 = vadd.f32 %v866_v38, %v4024_v43  ;;  %v2709_v51 = vmul.f32 -1.442695, %v3148_v46  ;;  %v906_v53 = vpop.f32.mrb[10].mxu1 }
 0x165   : > { %3366 = vpow2.f32 %v2707_v35  ;;  %v2708_v44 = vmul.f32 -1.442695, %v3149_v37  ;;  %v2982_v58 = vpop.f32.mrb[11].mxu1  ;;  %v599_v35 = vadd.f32 %v598_v60, %v422_v57  ;;  %v943_v38 = vadd.f32 %v4031_v56, %v906_v53 }
 0x166   : > { %v2710_v0 = vmul.f32 -1.442695, %v3150_v47  ;;  %v602_v47 = vadd.f32 %v601_v63, %v422_v57 }
 0x167   : > { %3368 = vpow2.f32 %v2708_v44 }
 0x168   : > { %3370 = vpow2.f32 %v2709_v51 }
 0x16f   : > { %v3367_v61 = vpop.eup %3366 }
 0x170   : > { %v918_v2 = vadd.f32 1.0, %v3367_v61 }
 0x171   : > { %v3369_v5 = vpop.eup %3368 }
 0x172   : > { %3372 = vrcp.f32 %v918_v2  ;;  %v919_v11 = vadd.f32 1.0, %v3369_v5  ;;  %v3371_v28 = vpop.eup %3370  ;;  %v4036_v5 = vpop.permute.xlu0 %961 }
 0x173   : > { %3374 = vpow2.f32 %v2710_v0  ;;  %v932_v46 = vadd.f32 1.0, %v3371_v28  ;;  %vm966_vm10 = vcmp.eq.s32.totalorder %v4036_v5, 1  ;;  %v4617_v5 = vmov 0.0  }
 0x174   : > { %3376 = vrcp.f32 %v919_v11 }
 0x17c   : > { %v3373_v32 = vpop.eup %3372 }
 0x17d   : > { %v3375_v34 = vpop.eup %3374  ;;  %v944_v37 = vmul.f32 %v3373_v32, %v942_v26  ;;  %v4039_v32 = vpop.permute.xlu0 %964 }
 0x17e   : > { %v3377_v44 = vpop.eup %3376  ;;  %v933_v58 = vadd.f32 1.0, %v3375_v34  ;;  %vm967_vm11 = vcmp.eq.s32.totalorder %v4039_v32, 1 }
 0x17f   : > { %v946_v50 = vadd.f32 %v944_v37, %v599_v35  ;;  %v945_v51 = vmul.f32 %v3377_v44, %v943_v38  ;;  %vm4193_vm0 = vmpackc.low %vm967_vm11, %vm966_vm10 }
 0x181   : > { %3378 = vtanh.f32 %v946_v50  ;;  %v947_v61 = vadd.f32 %v945_v51, %v602_v47 }
 0x182   : > { %3380 = vrcp.f32 %v932_v46 }
 0x183   : > { %3382 = vtanh.f32 %v947_v61 }
 0x184   : > { %3384 = vrcp.f32 %v933_v58 }
 0x18b   : > { %v3379_v0 = vpop.eup %3378 }
 0x18c   : > { %v3381_v48 = vpop.eup %3380  ;;  %v950_v2 = vsub.f32 %v3923_v40, %v3379_v0 }
 0x18d   : > { %v3383_v60 = vpop.eup %3382 }
 0x18e   : > { %v952_v11 = vmul.f32 %v3381_v48, %v950_v2  ;;  %v951_v53 = vsub.f32 %v3925_v41, %v3383_v60  ;;  %v3385_v26 = vpop.eup %3384 }
 0x190   : > { %v954_v57 = vadd.f32 %v3379_v0, %v952_v11  ;;  %v953_v63 = vmul.f32 %v3385_v26, %v951_v53 }
 0x192   : > { %v955_v28 = vadd.f32 %v3383_v60, %v953_v63  ;;  %v4046_v34 = vsel %vm966_vm10, %v954_v57, %v3923_v40 }
 0x194   : > { %v4051_v35 = vsel %vm967_vm11, %v955_v28, %v3925_v41  ;;  %v4053_v37 = vpack.c.bf16 %v955_v28, %v954_v57 }
 0x195   : > { %v983_v38 = vpack.c.bf16 %v4051_v35, %v4046_v34 }
 0x197   : > { %1017 = vmatmul.mubr.bf16.vlgmr.msra.gmra.mrb[4].mxu0 %v983_v38  ;;  %3000 = vmatmul.mubr.bf16.vlgmr.msra.gmra.mrb[12].mxu1 %v983_v38 }
 0x198   : > { %1140 = vmatpush1.bf16.msra.mxu0 %v3835_v8  ;;  %3004 = vmatpush3.bf16.msra.mxu1 %v3864_v18 }
 0x199   : > { %1141 = vmatprep.subr.bf16.mxu0 %v3838_v9  ;;  %3005 = vmatprep.subr.bf16.mxu1 %v4604_v21 }
 0x19a   : > { %1171 = vmatprep.mubr.bf16.mxu0 %v4602_v3  ;;  %3019 = vmatprep.mubr.msk.bf16.mxu1 %vm3634_vm1, %v4604_v21 }
 0x19c   : > { %1142 = vmatpush1.bf16.msra.mxu0 %v3841_v10  ;;  %3006 = vmatpush3.bf16.msra.mxu1 %v3875_v22 }
 0x19d   : > { %1143 = vmatprep.subr.bf16.mxu0 %v3849_v12  ;;  %3007 = vmatprep.subr.bf16.mxu1 %v4604_v21 }
 0x1a0   : > { %1144 = vmatpush1.bf16.msra.mxu0 %v3856_v15  ;;  %3008 = vmatpush3.bf16.msra.mxu1 %v3890_v27 }
 0x1a1   : > { %1145 = vmatprep.subr.bf16.mxu0 %v3859_v16  ;;  %3009 = vmatprep.subr.bf16.mxu1 %v4604_v21 }
 0x1a4   : > { %1146 = vmatpush1.bf16.msra.mxu0 %v3861_v17  ;;  %3010 = vmatpush3.bf16.msra.mxu1 %v3900_v30 }
 0x1a5   : > { %1147 = vmatprep.subr.bf16.mxu0 %v3870_v20  ;;  %3011 = vmatprep.subr.bf16.mxu1 %v4604_v21 }
 0x1a8   : > { %1148 = vmatpush1.bf16.msra.mxu0 %v3879_v23  ;;  %3012 = vmatpush3.bf16.msra.mxu1 %v3929_v42 }
 0x1a9   : > { %1149 = vmatprep.subr.bf16.mxu0 %v3883_v24  ;;  %3013 = vmatprep.subr.bf16.mxu1 %v4604_v21 }
 0x1ac   : > { %1150 = vmatpush1.bf16.msra.mxu0 %v3885_v25  ;;  %3014 = vmatpush3.bf16.msra.mxu1 %v3937_v45 }
 0x1ad   : > { %1151 = vmatprep.subr.bf16.mxu0 %v3896_v29  ;;  %3015 = vmatprep.subr.bf16.mxu1 %v4604_v21 }
 0x1b0   : > { %1152 = vmatpush1.bf16.msra.mxu0 %v3908_v33  ;;  %3016 = vmatpush3.bf16.msra.mxu1 %v3946_v49 }
 0x1b1   : > { %1153 = vmatprep.subr.bf16.mxu0 %v3917_v36  ;;  %3017 = vmatprep.subr.bf16.mxu1 %v4604_v21 }
 0x1b4   : > { %1154 = vmatpush1.bf16.msra.mxu0 %v3921_v39  ;;  %3018 = vmatpush3.bf16.msra.mxu1 %v3954_v52 }
 0x1b5   : > { %1294 = vmatprep.subr.bf16.mxu0 %v3832_v7  ;;  %3023 = vmatprep.subr.bf16.mxu1 %v4604_v21 }
 0x26a   : > { %v1018_v40 = vpop.f32.mrb[4].mxu0  ;;  %v1061_v41 = vpop.f32.mrb[12].mxu1 }
 0x26b   : > { %v3151_v44 = vadd.f32 %v1018_v40, %v4017_v19  ;;  %v1020_v46 = vpop.f32.mrb[5].mxu0  ;;  %v3001_v47 = vpop.f32.mrb[13].mxu1  ;;  %v1096_v40 = vadd.f32 %v4031_v56, %v1061_v41 }
 0x26c   : > { %v1022_v50 = vpop.f32.mrb[6].mxu0  ;;  %v1064_v51 = vpop.f32.mrb[14].mxu1  ;;  %v3152_v7 = vadd.f32 %v1020_v46, %v4024_v43 }
 0x26d   : > { %v2712_v58 = vmul.f32 -1.442695, %v3151_v44  ;;  %v3153_v61 = vadd.f32 %v1022_v50, %v4017_v19  ;;  %v1024_v0 = vpop.f32.mrb[7].mxu0  ;;  %v3002_v48 = vpop.f32.mrb[15].mxu1  ;;  %v1097_v46 = vadd.f32 %v4031_v56, %v1064_v51 }
 0x26e   : > { %v3154_v60 = vadd.f32 %v1024_v0, %v4024_v43  ;;  %v2714_v11 = vmul.f32 -1.442695, %v3152_v7  ;;  %v4100_v41 = vpop.permute.xlu1 %1115 }
 0x26f   : > { %3386 = vpow2.f32 %v2712_v58  ;;  %v2713_v2 = vmul.f32 -1.442695, %v3153_v61  ;;  %vm1120_vm12 = vcmp.eq.s32.totalorder %v4100_v41, 1 }
 0x270   : > { %v2715_v26 = vmul.f32 -1.442695, %v3154_v60 }
 0x271   : > { %3388 = vpow2.f32 %v2713_v2 }
 0x272   : > { %3390 = vpow2.f32 %v2714_v11 }
 0x279   : > { %v3387_v53 = vpop.eup %3386 }
 0x27a   : > { %v1076_v57 = vadd.f32 1.0, %v3387_v53 }
 0x27b   : > { %v3389_v63 = vpop.eup %3388 }
 0x27c   : > { %3392 = vrcp.f32 %v1076_v57  ;;  %v1077_v28 = vadd.f32 1.0, %v3389_v63  ;;  %v3391_v38 = vpop.eup %3390 }
 0x27d   : > { %3394 = vpow2.f32 %v2715_v26  ;;  %v1090_v61 = vadd.f32 1.0, %v3391_v38  ;;  %v4104_v38 = vpop.permute.xlu1 %1118 }
 0x27e   : > { %3396 = vrcp.f32 %v1077_v28  ;;  %vm1121_vm13 = vcmp.eq.s32.totalorder %v4104_v38, 1 }
 0x27f   : > { %vm2840_vm2 = vmpackc.low %vm1121_vm13, %vm1120_vm12 }
 0x286   : > { %v3393_v44 = vpop.eup %3392 }
 0x287   : > { %v3395_v47 = vpop.eup %3394  ;;  %v1098_v50 = vmul.f32 %v3393_v44, %v1096_v40 }
 0x288   : > { %v3397_v58 = vpop.eup %3396  ;;  %v1091_v7 = vadd.f32 1.0, %v3395_v47 }
 0x289   : > { %v1100_v0 = vadd.f32 %v1098_v50, %v4002_v59  ;;  %v1099_v48 = vmul.f32 %v3397_v58, %v1097_v46 }
 0x28b   : > { %3398 = vtanh.f32 %v1100_v0  ;;  %v1101_v2 = vadd.f32 %v1099_v48, %v4004_v62 }
 0x28c   : > { %3400 = vrcp.f32 %v1090_v61 }
 0x28d   : > { %3402 = vtanh.f32 %v1101_v2 }
 0x28e   : > { %3404 = vrcp.f32 %v1091_v7 }
 0x295   : > { %v3399_v60 = vpop.eup %3398 }
 0x296   : > { %v3401_v11 = vpop.eup %3400  ;;  %v1104_v53 = vsub.f32 %v4046_v34, %v3399_v60 }
 0x297   : > { %v3403_v26 = vpop.eup %3402 }
 0x298   : > { %v1106_v51 = vmul.f32 %v3401_v11, %v1104_v53  ;;  %v1105_v57 = vsub.f32 %v4051_v35, %v3403_v26  ;;  %v3405_v63 = vpop.eup %3404 }
 0x29a   : > { %v1107_v59 = vmul.f32 %v3405_v63, %v1105_v57  ;;  %v1108_v28 = vadd.f32 %v3399_v60, %v1106_v51 }
 0x29c   : > { %v1109_v62 = vadd.f32 %v3403_v26, %v1107_v59  ;;  %v4111_v40 = vsel %vm1120_vm12, %v1108_v28, %v4046_v34 }
 0x29e   : > { %v4116_v44 = vsel %vm1121_vm13, %v1109_v62, %v4051_v35  ;;  %v4118_v47 = vpack.c.bf16 %v1109_v62, %v1108_v28 }
 0x29f   : > { %v1138_v50 = vpack.c.bf16 %v4116_v44, %v4111_v40 }
 0x2a1   : > { %1172 = vmatmul.mubr.bf16.vlgmr.msra.gmra.mrb[8].mxu0 %v1138_v50  ;;  %3020 = vmatmul.mubr.bf16.vlgmr.msra.gmra.mrb[16].mxu1 %v1138_v50 }
 0x2a2   : > { %1295 = vmatpush1.bf16.msra.mxu0 %v3835_v8  ;;  %3024 = vmatpush3.bf16.msra.mxu1 %v3864_v18  ;;  %v3304_v8 = vld [vmem:[#allocation8 + $0x4] ss:$12 sps:$4 sm:$0xff]  }
 0x2a3   : > { %1296 = vmatprep.subr.bf16.mxu0 %v3838_v9  ;;  %3025 = vmatprep.subr.bf16.mxu1 %v4604_v21  ;;  %v4155_v9 = vld [vmem:[#allocation8 + $0x8] ss:$12 sps:$4 sm:$0xff]  }
 0x2a4   : > { %1326 = vmatprep.mubr.bf16.mxu0 %v4602_v3  ;;  %3039 = vmatprep.mubr.msk.bf16.mxu1 %vm3634_vm1, %v4604_v21 }
 0x2a6   : > { %1297 = vmatpush1.bf16.msra.mxu0 %v3841_v10  ;;  %3026 = vmatpush3.bf16.msra.mxu1 %v3875_v22 }
 0x2a7   : > { %1298 = vmatprep.subr.bf16.mxu0 %v3849_v12  ;;  %3027 = vmatprep.subr.bf16.mxu1 %v4604_v21 }
 0x2aa   : > { %1299 = vmatpush1.bf16.msra.mxu0 %v3856_v15  ;;  %3028 = vmatpush3.bf16.msra.mxu1 %v3890_v27 }
 0x2ab   : > { %1300 = vmatprep.subr.bf16.mxu0 %v3859_v16  ;;  %3029 = vmatprep.subr.bf16.mxu1 %v4604_v21 }
 0x2ae   : > { %1301 = vmatpush1.bf16.msra.mxu0 %v3861_v17  ;;  %3030 = vmatpush3.bf16.msra.mxu1 %v3900_v30 }
 0x2af   : > { %1302 = vmatprep.subr.bf16.mxu0 %v3870_v20  ;;  %3031 = vmatprep.subr.bf16.mxu1 %v4604_v21 }
 0x2b2   : > { %1303 = vmatpush1.bf16.msra.mxu0 %v3879_v23  ;;  %3032 = vmatpush3.bf16.msra.mxu1 %v3929_v42 }
 0x2b3   : > { %1304 = vmatprep.subr.bf16.mxu0 %v3883_v24  ;;  %3033 = vmatprep.subr.bf16.mxu1 %v4604_v21 }
 0x2b6   : > { %1305 = vmatpush1.bf16.msra.mxu0 %v3885_v25  ;;  %3034 = vmatpush3.bf16.msra.mxu1 %v3937_v45 }
 0x2b7   : > { %1306 = vmatprep.subr.bf16.mxu0 %v3896_v29  ;;  %3035 = vmatprep.subr.bf16.mxu1 %v4604_v21 }
 0x2ba   : > { %1307 = vmatpush1.bf16.msra.mxu0 %v3908_v33  ;;  %3036 = vmatpush3.bf16.msra.mxu1 %v3946_v49 }
 0x2bb   : > { %1308 = vmatprep.subr.bf16.mxu0 %v3917_v36  ;;  %3037 = vmatprep.subr.bf16.mxu1 %v4604_v21 }
 0x2be   : > { %1309 = vmatpush1.bf16.msra.mxu0 %v3921_v39  ;;  %3038 = vmatpush3.bf16.msra.mxu1 %v3954_v52 }
 0x2bf   : > { %1622 = vmatprep.subr.bf16.mxu0 %v3304_v8  ;;  %3043 = vmatprep.subr.bf16.mxu1 %v4155_v9  ;;  %v4170_v8 = vpop.permute.xlu0 %1270 }
 0x2c0   : > { %vm1275_vm15 = vcmp.eq.s32.totalorder %v4170_v8, 1 }
 0x374   : > { %v1173_v10 = vpop.f32.mrb[8].mxu0  ;;  %v1216_v12 = vpop.f32.mrb[16].mxu1 }
 0x375   : > { %v3155_v15 = vadd.f32 %v1173_v10, %v4017_v19  ;;  %v1175_v16 = vpop.f32.mrb[9].mxu0  ;;  %v3021_v17 = vpop.f32.mrb[17].mxu1  ;;  %v1251_v34 = vadd.f32 %v4031_v56, %v1216_v12  ;;  %v3302_v10 = vld [vmem:[#allocation8] ss:$12 sps:$4 sm:$0xff]  }
 0x376   : > { %v1177_v18 = vpop.f32.mrb[10].mxu0  ;;  %v1219_v20 = vpop.f32.mrb[18].mxu1  ;;  %v3156_v29 = vadd.f32 %v1175_v16, %v4024_v43 }
 0x377   : > { %v2716_v22 = vmul.f32 -1.442695, %v3155_v15  ;;  %v3157_v23 = vadd.f32 %v1177_v18, %v4017_v19  ;;  %v1179_v24 = vpop.f32.mrb[11].mxu0  ;;  %v3022_v25 = vpop.f32.mrb[19].mxu1  ;;  %v1252_v61 = vadd.f32 %v4031_v56, %v1219_v20  ;;  %v3308_v18 = vld [vmem:[#allocation8 + $0x1c] ss:$12 sps:$4 sm:$0xff]  }
 0x378   : > { %v3158_v30 = vadd.f32 %v1179_v24, %v4024_v43  ;;  %v2718_v33 = vmul.f32 -1.442695, %v3156_v29  ;;  %v3309_v20 = vld [vmem:[#allocation8 + $0x20] ss:$12 sps:$4 sm:$0xff]   ;;  %v3317_v25 = vld [vmem:[#allocation8 + $0x50] ss:$12 sps:$4 sm:$0xff]  }
 0x379   : > { %3406 = vpow2.f32 %v2716_v22  ;;  %v2717_v27 = vmul.f32 -1.442695, %v3157_v23  ;;  %v3312_v22 = vld [vmem:[#allocation8 + $0x34] ss:$12 sps:$4 sm:$0xff]   ;;  %v3313_v23 = vld [vmem:[#allocation8 + $0x38] ss:$12 sps:$4 sm:$0xff]  }
 0x37a   : > { %v2719_v39 = vmul.f32 -1.442695, %v3158_v30  ;;  %v3316_v24 = vld [vmem:[#allocation8 + $0x4c] ss:$12 sps:$4 sm:$0xff]   ;;  %v3320_v29 = vld [vmem:[#allocation8 + $0x64] ss:$12 sps:$4 sm:$0xff]  }
 0x37b   : > { %3408 = vpow2.f32 %v2717_v27  ;;  %v3314_v27 = vld [vmem:[#allocation8 + $0x48] ss:$12 sps:$4 sm:$0xff]  }
 0x37c   : > { %3410 = vpow2.f32 %v2718_v33  ;;  %v3321_v30 = vld [vmem:[#allocation8 + $0x68] ss:$12 sps:$4 sm:$0xff]   ;;  %v3318_v33 = vld [vmem:[#allocation8 + $0x60] ss:$12 sps:$4 sm:$0xff]  }
 0x383   : > { %v3407_v36 = vpop.eup %3406 }
 0x384   : > { %v1231_v42 = vadd.f32 1.0, %v3407_v36  ;;  %v3324_v36 = vld [vmem:[#allocation8 + $0x7c] ss:$12 sps:$4 sm:$0xff]  }
 0x385   : > { %v3409_v45 = vpop.eup %3408 }
 0x386   : > { %3412 = vrcp.f32 %v1231_v42  ;;  %v1232_v49 = vadd.f32 1.0, %v3409_v45  ;;  %v3411_v52 = vpop.eup %3410  ;;  %v3322_v42 = vld [vmem:[#allocation8 + $0x78] ss:$12 sps:$4 sm:$0xff]   ;;  %v3328_v45 = vld [vmem:[#allocation8 + $0x94] ss:$12 sps:$4 sm:$0xff]  }
 0x387   : > { %3414 = vpow2.f32 %v2719_v39  ;;  %v1245_v48 = vadd.f32 1.0, %v3411_v52  ;;  %v3325_v39 = vld [vmem:[#allocation8 + $0x80] ss:$12 sps:$4 sm:$0xff]   ;;  %v3326_v52 = vld [vmem:[#allocation8 + $0x90] ss:$12 sps:$4 sm:$0xff]  }
 0x388   : > { %3416 = vrcp.f32 %v1232_v49  ;;  %v3329_v49 = vld [vmem:[#allocation8 + $0x98] ss:$12 sps:$4 sm:$0xff]  }
 0x390   : > { %v3413_v35 = vpop.eup %3412 }
 0x391   : > { %v3415_v46 = vpop.eup %3414  ;;  %v1253_v58 = vmul.f32 %v3413_v35, %v1251_v34  ;;  %v3332_v34 = vld [vmem:[#allocation8 + $0xac] ss:$12 sps:$4 sm:$0xff]   ;;  %v3333_v35 = vld [vmem:[#allocation8 + $0xb0] ss:$12 sps:$4 sm:$0xff]  }
 0x392   : > { %v3417_v0 = vpop.eup %3416  ;;  %v1246_v11 = vadd.f32 1.0, %v3415_v46  ;;  %v3330_v46 = vld [vmem:[#allocation8 + $0xa8] ss:$12 sps:$4 sm:$0xff]  }
 0x393   : > { %v1255_v2 = vadd.f32 %v1253_v58, %v4008_v4  ;;  %v1254_v7 = vmul.f32 %v3417_v0, %v1252_v61  ;;  %v4168_v4 = vpop.permute.xlu1 %1273  ;;  %v4222_v58 = vld [vmem:[#allocation10] ss:$12 sps:$4 sm:$0xff]   ;;  %v4226_v61 = vld [vmem:[#allocation10 + $0x1c] ss:$12 sps:$4 sm:$0xff]   ;;  %v4228_v0 = vld [vmem:[#allocation10 + $0x18] ss:$12 sps:$4 sm:$0xff]  }
 0x394   : > { %vm1276_vm14 = vcmp.eq.s32.totalorder %v4168_v4, 1 }
 0x395   : > { %3418 = vtanh.f32 %v1255_v2  ;;  %v1256_v60 = vadd.f32 %v1254_v7, %v4012_v13  ;;  %vm2843_vm3 = vmpackc.low %vm1276_vm14, %vm1275_vm15  ;;  %v4236_v2 = vld [vmem:[#allocation10 + $0x4c] ss:$12 sps:$4 sm:$0xff]   ;;  %v4240_v7 = vld [vmem:[#allocation10 + $0x48] ss:$12 sps:$4 sm:$0xff]  }
 0x396   : > { %3420 = vrcp.f32 %v1245_v48  ;;  %v4234_v48 = vld [vmem:[#allocation10 + $0x30] ss:$12 sps:$4 sm:$0xff]  }
 0x397   : > { %3422 = vtanh.f32 %v1256_v60  ;;  %v4243_v60 = vld [vmem:[#allocation10 + $0x64] ss:$12 sps:$4 sm:$0xff]  }
 0x398   : > { %3424 = vrcp.f32 %v1246_v11  ;;  %v4246_v11 = vld [vmem:[#allocation10 + $0x60] ss:$12 sps:$4 sm:$0xff]  }
 0x39f   : > { %v3419_v53 = vpop.eup %3418 }
 0x3a0   : > { %v3421_v26 = vpop.eup %3420  ;;  %v1259_v51 = vsub.f32 %v4111_v40, %v3419_v53 }
 0x3a1   : > { %v3423_v57 = vpop.eup %3422 }
 0x3a2   : > { %v1261_v63 = vmul.f32 %v3421_v26, %v1259_v51  ;;  %v1260_v59 = vsub.f32 %v4116_v44, %v3423_v57  ;;  %v3425_v28 = vpop.eup %3424  ;;  %v4252_v26 = vld [vmem:[#allocation10 + $0x78] ss:$12 sps:$4 sm:$0xff]   ;;  %v4256_v51 = vld [vmem:[#allocation10 + $0x94] ss:$12 sps:$4 sm:$0xff]  }
 0x3a4   : > { %v1262_v62 = vmul.f32 %v3425_v28, %v1260_v59  ;;  %v1263_v50 = vadd.f32 %v3419_v53, %v1261_v63  ;;  %v4249_v53 = vld [vmem:[#allocation10 + $0x7c] ss:$12 sps:$4 sm:$0xff]   ;;  %v4262_v59 = vld [vmem:[#allocation10 + $0xac] ss:$12 sps:$4 sm:$0xff]  }
 0x3a5   : > { %v4260_v63 = vld [vmem:[#allocation10 + $0x90] ss:$12 sps:$4 sm:$0xff]   ;;  %v4266_v28 = vld [vmem:[#allocation10 + $0x20] ss:$12 sps:$4 sm:$0xff]  }
 0x3a6   : > { %v1264_v13 = vadd.f32 %v3423_v57, %v1262_v62  ;;  %v4177_v12 = vsel %vm1275_vm15, %v1263_v50, %v4111_v40  ;;  %v4258_v57 = vld [vmem:[#allocation10 + $0x8] ss:$12 sps:$4 sm:$0xff]  }
 0x3a7   : > { %v4270_v62 = vld [vmem:[#allocation10 + $0xa8] ss:$12 sps:$4 sm:$0xff]  }
 0x3a8   : > { %v4182_v15 = vsel %vm1276_vm14, %v1264_v13, %v4116_v44  ;;  %v4184_v16 = vpack.c.bf16 %v1264_v13, %v1263_v50  ;;  %v3306_v44 = vld [vmem:[#allocation8 + $0x18] ss:$12 sps:$4 sm:$0xff]   ;;  %v4280_v13 = vld [vmem:[#allocation10 + $0x50] ss:$12 sps:$4 sm:$0xff]  }
 0x3a9   : > { %v1293_v17 = vpack.c.bf16 %v4182_v15, %v4177_v12  ;;  %v4276_v50 = vld [vmem:[#allocation10 + $0x38] ss:$12 sps:$4 sm:$0xff]  }
 0x3ab   : > { %1327 = vmatmul.mubr.bf16.vlgmr.msra.gmra.mrb[12].mxu0 %v1293_v17  ;;  %3040 = vmatmul.mubr.bf16.vlgmr.msra.gmra.mrb[20].mxu1 %v1293_v17  ;;  %v4292_v17 = vld [vmem:[#allocation10 + $0x98] ss:$12 sps:$4 sm:$0xff]  }
 0x3ac   : > { %1623 = vmatpush1.bf16.msra.mxu0 %v3302_v10  ;;  %3044 = vmatpush3.bf16.msra.mxu1 %v4155_v9  ;;  %v3310_v9 = vld [vmem:[#allocation8 + $0x30] ss:$12 sps:$4 sm:$0xff]   ;;  %v4284_v10 = vld [vmem:[#allocation10 + $0x68] ss:$12 sps:$4 sm:$0xff]  }
 0x3ad   : > { %3059 = vmatprep.mubr.msk.bf16.mxu1 %vm4193_vm0, %v4053_v37  ;;  %1624 = vmatprep.subr.bf16.mxu0 %v3308_v18  ;;  %v4296_v18 = vld [vmem:[#allocation10 + $0xb0] ss:$12 sps:$4 sm:$0xff]  }
 0x3ae   : > { %3045 = vmatprep.subr.bf16.mxu1 %v3309_v20  ;;  %1654 = vmatprep.mubr.bf16.mxu0 %v4602_v3 }
 0x3b0   : > { %1625 = vmatpush1.bf16.msra.mxu0 %v3306_v44  ;;  %3046 = vmatpush3.bf16.msra.mxu1 %v3309_v20 }
 0x3b1   : > { %1626 = vmatprep.subr.bf16.mxu0 %v3312_v22  ;;  %3047 = vmatprep.subr.bf16.mxu1 %v3313_v23 }
 0x3b4   : > { %1627 = vmatpush1.bf16.msra.mxu0 %v3310_v9  ;;  %3048 = vmatpush3.bf16.msra.mxu1 %v3313_v23 }
 0x3b5   : > { %1628 = vmatprep.subr.bf16.mxu0 %v3316_v24  ;;  %3049 = vmatprep.subr.bf16.mxu1 %v3317_v25 }
 0x3b8   : > { %1629 = vmatpush1.bf16.msra.mxu0 %v3314_v27  ;;  %3050 = vmatpush3.bf16.msra.mxu1 %v3317_v25 }
 0x3b9   : > { %1630 = vmatprep.subr.bf16.mxu0 %v3320_v29  ;;  %3051 = vmatprep.subr.bf16.mxu1 %v3321_v30 }
 0x3bc   : > { %1631 = vmatpush1.bf16.msra.mxu0 %v3318_v33  ;;  %3052 = vmatpush3.bf16.msra.mxu1 %v3321_v30 }
 0x3bd   : > { %1632 = vmatprep.subr.bf16.mxu0 %v3324_v36  ;;  %3053 = vmatprep.subr.bf16.mxu1 %v3325_v39 }
 0x3c0   : > { %1633 = vmatpush1.bf16.msra.mxu0 %v3322_v42  ;;  %3054 = vmatpush3.bf16.msra.mxu1 %v3325_v39 }
 0x3c1   : > { %1634 = vmatprep.subr.bf16.mxu0 %v3328_v45  ;;  %3055 = vmatprep.subr.bf16.mxu1 %v3329_v49 }
 0x3c4   : > { %1635 = vmatpush1.bf16.msra.mxu0 %v3326_v52  ;;  %3056 = vmatpush3.bf16.msra.mxu1 %v3329_v49 }
 0x3c5   : > { %1636 = vmatprep.subr.bf16.mxu0 %v3332_v34  ;;  %3057 = vmatprep.subr.bf16.mxu1 %v3333_v35 }
 0x3c8   : > { %1637 = vmatpush1.bf16.msra.mxu0 %v3330_v46  ;;  %3058 = vmatpush3.bf16.msra.mxu1 %v3333_v35 }
 0x3c9   : > { %3067 = vmatprep.subr.bf16.mxu1 %v4604_v21 }
 0x3cb   : > { %2839 = vmatmul.mubr.msk.bf16.vlgmr.msra.gmra.mrb[16].mxu0 %vm4193_vm0, %v4053_v37  ;;  %3060 = vmatmul.mubr.msk.bf16.vlgmr.msra.gmra.mrb[24].mxu1 %vm2840_vm2, %v4118_v47  ;;  %v4220_v37 = vld [vmem:[#allocation10 + $0x4] ss:$12 sps:$4 sm:$0xff]  }
 0x3cc   : > { %3063 = vmatprep.mubr.msk.bf16.mxu1 %vm2843_vm3, %v4184_v16  ;;  %1664 = vmatprep.mubr.bf16.mxu0 %v4602_v3 }
 0x3cd   : > { %1954 = vmatprep.subr.bf16.mxu0 %v4220_v37  ;;  %3068 = vmatpush3.bf16.msra.mxu1 %v4258_v57 }
 0x3ce   : > { %1955 = vmatpush1.bf16.msra.mxu0 %v4222_v58  ;;  %3069 = vmatprep.subr.bf16.mxu1 %v4604_v21 }
 0x3cf   : > { %1956 = vmatprep.subr.bf16.mxu0 %v4226_v61 }
 0x3d1   : > { %3070 = vmatpush3.bf16.msra.mxu1 %v4266_v28 }
 0x3d2   : > { %1957 = vmatpush1.bf16.msra.mxu0 %v4228_v0  ;;  %3071 = vmatprep.subr.bf16.mxu1 %v4604_v21 }
 0x3d3   : > { %2842 = vmatmul.mubr.msk.bf16.gmra.mrb[20].mxu0 %vm2840_vm2, %v4118_v47  ;;  %v4232_v47 = vld [vmem:[#allocation10 + $0x34] ss:$12 sps:$4 sm:$0xff]  }
 0x3d4   : > { %1674 = vmatprep.mubr.bf16.mxu0 %v4602_v3  ;;  %1958 = vmatprep.subr.bf16.mxu0 %v4232_v47 }
 0x3d5   : > { %3072 = vmatpush3.bf16.msra.mxu1 %v4276_v50 }
 0x3d6   : > { %1959 = vmatpush1.bf16.msra.mxu0 %v4234_v48  ;;  %3073 = vmatprep.subr.bf16.mxu1 %v4604_v21 }
 0x3d7   : > { %1960 = vmatprep.subr.bf16.mxu0 %v4236_v2 }
 0x3d9   : > { %3074 = vmatpush3.bf16.msra.mxu1 %v4280_v13 }
 0x3da   : > { %1961 = vmatpush1.bf16.msra.mxu0 %v4240_v7  ;;  %3075 = vmatprep.subr.bf16.mxu1 %v4604_v21 }
 0x3db   : > { %2845 = vmatmul.mubr.msk.bf16.gmra.mrb[24].mxu0 %vm2843_vm3, %v4184_v16  ;;  %1962 = vmatprep.subr.bf16.mxu0 %v4243_v60  ;;  %v4288_v16 = vld [vmem:[#allocation10 + $0x80] ss:$12 sps:$4 sm:$0xff]  }
 0x3dc   : > { %1684 = vmatprep.mubr.bf16.mxu0 %v4602_v3 }
 0x3dd   : > { %3076 = vmatpush3.bf16.msra.mxu1 %v4284_v10 }
 0x3de   : > { %1963 = vmatpush1.bf16.msra.mxu0 %v4246_v11  ;;  %3077 = vmatprep.subr.bf16.mxu1 %v4604_v21 }
 0x3df   : > { %1964 = vmatprep.subr.bf16.mxu0 %v4249_v53 }
 0x3e1   : > { %3078 = vmatpush3.bf16.msra.mxu1 %v4288_v16 }
 0x3e2   : > { %1965 = vmatpush1.bf16.msra.mxu0 %v4252_v26  ;;  %3079 = vmatprep.subr.bf16.mxu1 %v4604_v21 }
 0x3e3   : > { %1966 = vmatprep.subr.bf16.mxu0 %v4256_v51 }
 0x3e5   : > { %3080 = vmatpush3.bf16.msra.mxu1 %v4292_v17 }
 0x3e6   : > { %1967 = vmatpush1.bf16.msra.mxu0 %v4260_v63  ;;  %3081 = vmatprep.subr.bf16.mxu1 %v4604_v21 }
 0x3e7   : > { %1968 = vmatprep.subr.bf16.mxu0 %v4262_v59 }
 0x3e9   : > { %3082 = vmatpush3.bf16.msra.mxu1 %v4296_v18 }
 0x3ea   : > { %1969 = vmatpush1.bf16.msra.mxu0 %v4270_v62  ;;  %3087 = vmatprep.subr.bf16.mxu1 %v4604_v21 }
 0x3eb   : > { %2105 = vmatprep.subr.bf16.mxu0 %v4220_v37 }
 0x47e   : > { %v1328_v20 = vpop.f32.mrb[12].mxu0  ;;  %v1371_v40 = vpop.f32.mrb[20].mxu1 }
 0x47f   : > { %v3159_v44 = vadd.f32 %v1328_v20, %v4017_v19  ;;  %v1330_v22 = vpop.f32.mrb[13].mxu0  ;;  %v3041_v23 = vpop.f32.mrb[21].mxu1  ;;  %v1406_v46 = vadd.f32 %v4031_v56, %v1371_v40 }
 0x480   : > { %v1332_v9 = vpop.f32.mrb[14].mxu0  ;;  %v1374_v24 = vpop.f32.mrb[22].mxu1  ;;  %v3160_v36 = vadd.f32 %v1330_v22, %v4024_v43 }
 0x481   : > { %v2720_v25 = vmul.f32 -1.442695, %v3159_v44  ;;  %v3161_v27 = vadd.f32 %v1332_v9, %v4017_v19  ;;  %v1334_v29 = vpop.f32.mrb[15].mxu0  ;;  %v3042_v30 = vpop.f32.mrb[23].mxu1  ;;  %v1407_v22 = vadd.f32 %v4031_v56, %v1374_v24 }
 0x482   : > { %v3162_v39 = vadd.f32 %v1334_v29, %v4024_v43  ;;  %v2722_v42 = vmul.f32 -1.442695, %v3160_v36 }
 0x483   : > { %3426 = vpow2.f32 %v2720_v25  ;;  %v2721_v33 = vmul.f32 -1.442695, %v3161_v27 }
 0x484   : > { %v2723_v49 = vmul.f32 -1.442695, %v3162_v39 }
 0x485   : > { %3428 = vpow2.f32 %v2721_v33 }
 0x486   : > { %3430 = vpow2.f32 %v2722_v42 }
 0x48d   : > { %v3427_v45 = vpop.eup %3426 }
 0x48e   : > { %v1386_v52 = vadd.f32 1.0, %v3427_v45  ;;  %v4318_v45 = vpop.permute.xlu0 %1425 }
 0x48f   : > { %v3429_v34 = vpop.eup %3428  ;;  %vm1430_vm4 = vcmp.eq.s32.totalorder %v4318_v45, 1 }
 0x490   : > { %3432 = vrcp.f32 %v1386_v52  ;;  %v1387_v35 = vadd.f32 1.0, %v3429_v34  ;;  %v3431_v19 = vpop.eup %3430  ;;  %v4321_v34 = vpop.permute.xlu1 %1428 }
 0x491   : > { %3434 = vpow2.f32 %v2723_v49  ;;  %v1400_v43 = vadd.f32 1.0, %v3431_v19  ;;  %vm1431_vm5 = vcmp.eq.s32.totalorder %v4321_v34, 1 }
 0x492   : > { %3436 = vrcp.f32 %v1387_v35  ;;  %vm2846_vm6 = vmpackc.low %vm1431_vm5, %vm1430_vm4 }
 0x49a   : > { %v3433_v20 = vpop.eup %3432 }
 0x49b   : > { %v3435_v44 = vpop.eup %3434  ;;  %v1408_v23 = vmul.f32 %v3433_v20, %v1406_v46 }
 0x49c   : > { %v3437_v9 = vpop.eup %3436  ;;  %v1401_v33 = vadd.f32 1.0, %v3435_v44 }
 0x49d   : > { %v1410_v25 = vadd.f32 %v1408_v23, %v4006_v1  ;;  %v1409_v27 = vmul.f32 %v3437_v9, %v1407_v22  ;;  %v4336_v22 = vld [vmem:[#allocation3] sm:$0xff]  ;;  %v4338_v9 = vld [vmem:[#allocation3 + $0x8] sm:$0xff] }
 0x49e   : > { %v4308_v29 = vpop.f32.mrb[24].mxu1 }
 0x49f   : > { %3438 = vtanh.f32 %v1410_v25  ;;  %v1411_v30 = vadd.f32 %v1409_v27, %v4010_v6  ;;  %v4311_v36 = vpop.f32.mrb[25].mxu1 }
 0x4a0   : > { %3440 = vrcp.f32 %v1400_v43  ;;  %v4313_v40 = vpop.f32.mrb[26].mxu1 }
 0x4a1   : > { %3442 = vtanh.f32 %v1411_v30  ;;  %v4315_v39 = vpop.f32.mrb[27].mxu1  ;;  %v1477_v30 = vld [vmem:[%s4597_s7] ss:$2 sm:$0x7] }
 0x4a2   : > { %3444 = vrcp.f32 %v1401_v33  ;;  %v4392_v33 = vrot.slane %v1477_v30, %v413_v14 }
 0x4a9   : > { %v3439_v56 = vpop.eup %3438 }
 0x4aa   : > { %v3441_v24 = vpop.eup %3440  ;;  %v1414_v1 = vsub.f32 %v4177_v12, %v3439_v56 }
 0x4ab   : > { %v3443_v42 = vpop.eup %3442 }
 0x4ac   : > { %v1415_v49 = vsub.f32 %v4182_v15, %v3443_v42  ;;  %v1416_v6 = vmul.f32 %v3441_v24, %v1414_v1  ;;  %v3445_v52 = vpop.eup %3444 }
 0x4ae   : > { %v1417_v35 = vmul.f32 %v3445_v52, %v1415_v49  ;;  %v1418_v19 = vadd.f32 %v3439_v56, %v1416_v6 }
 0x4b0   : > { %v1419_v46 = vadd.f32 %v3443_v42, %v1417_v35  ;;  %v1437_v20 = vsel %vm1430_vm4, %v1418_v19, %v4177_v12  ;;  %v1825_v12 = vpack.c.bf16 %v4338_v9, %v4336_v22 }
 0x4b1   : > { %1439 = vst [vmem:[#allocation2] sm:$0xff] %v1437_v20 }
 0x4b2   : > { %v1438_v44 = vsel %vm1431_vm5, %v1419_v46, %v4182_v15  ;;  %v2847_v23 = vpack.c.bf16 %v1419_v46, %v1418_v19 }
 0x4b3   : > { %1440 = vst [vmem:[#allocation2 + $0x8] sm:$0xff] %v1438_v44  ;;  %v4398_v44 = vrot.slane %v1477_v30, %v417_v31  ;;  %v4405_v31 = vld [vmem:[%s4597_s7 + $0x1] ss:$0 sm:$0xff] }
 0x4b4   : > { %2848 = vmatmul.mubr.msk.bf16.gmra.mrb[28].mxu0 %vm2846_vm6, %v2847_v23  ;;  %3064 = vmatmul.mubr.msk.bf16.gmra.mrb[28].mxu1 %vm2846_vm6, %v2847_v23 }
 0x4b5   : > { %1986 = vmatprep.mubr.bf16.mxu0 %v4602_v3  ;;  %3083 = vmatprep.mubr.msk.bf16.mxu1 %vm3634_vm1, %v4604_v21 }
 0x4bc   : > { %1987 = vmatmul.mubr.bf16.vlgmr.msra.gmra.mrb[16].mxu0 %v1825_v12  ;;  %3084 = vmatmul.mubr.bf16.vlgmr.msra.gmra.mrb[32].mxu1 %v1825_v12 }
 0x4bd   : > { %2106 = vmatpush1.bf16.msra.mxu0 %v4222_v58  ;;  %3088 = vmatpush3.bf16.msra.mxu1 %v4258_v57 }
 0x4be   : > { %2107 = vmatprep.subr.bf16.mxu0 %v4226_v61  ;;  %3089 = vmatprep.subr.bf16.mxu1 %v4604_v21 }
 0x4bf   : > { %2137 = vmatprep.mubr.bf16.mxu0 %v4602_v3  ;;  %3103 = vmatprep.mubr.msk.bf16.mxu1 %vm3634_vm1, %v4604_v21 }
 0x4c1   : > { %2108 = vmatpush1.bf16.msra.mxu0 %v4228_v0  ;;  %3090 = vmatpush3.bf16.msra.mxu1 %v4266_v28 }
 0x4c2   : > { %2109 = vmatprep.subr.bf16.mxu0 %v4232_v47  ;;  %3091 = vmatprep.subr.bf16.mxu1 %v4604_v21 }
 0x4c5   : > { %2110 = vmatpush1.bf16.msra.mxu0 %v4234_v48  ;;  %3092 = vmatpush3.bf16.msra.mxu1 %v4276_v50 }
 0x4c6   : > { %2111 = vmatprep.subr.bf16.mxu0 %v4236_v2  ;;  %3093 = vmatprep.subr.bf16.mxu1 %v4604_v21 }
 0x4c9   : > { %2112 = vmatpush1.bf16.msra.mxu0 %v4240_v7  ;;  %3094 = vmatpush3.bf16.msra.mxu1 %v4280_v13 }
 0x4ca   : > { %2113 = vmatprep.subr.bf16.mxu0 %v4243_v60  ;;  %3095 = vmatprep.subr.bf16.mxu1 %v4604_v21 }
 0x4cd   : > { %2114 = vmatpush1.bf16.msra.mxu0 %v4246_v11  ;;  %3096 = vmatpush3.bf16.msra.mxu1 %v4284_v10 }
 0x4ce   : > { %2115 = vmatprep.subr.bf16.mxu0 %v4249_v53  ;;  %3097 = vmatprep.subr.bf16.mxu1 %v4604_v21 }
 0x4d1   : > { %2116 = vmatpush1.bf16.msra.mxu0 %v4252_v26  ;;  %3098 = vmatpush3.bf16.msra.mxu1 %v4288_v16 }
 0x4d2   : > { %2117 = vmatprep.subr.bf16.mxu0 %v4256_v51  ;;  %3099 = vmatprep.subr.bf16.mxu1 %v4604_v21 }
 0x4d5   : > { %2118 = vmatpush1.bf16.msra.mxu0 %v4260_v63  ;;  %3100 = vmatpush3.bf16.msra.mxu1 %v4292_v17 }
 0x4d6   : > { %2119 = vmatprep.subr.bf16.mxu0 %v4262_v59  ;;  %3101 = vmatprep.subr.bf16.mxu1 %v4604_v21 }
 0x4d9   : > { %2120 = vmatpush1.bf16.msra.mxu0 %v4270_v62  ;;  %3102 = vmatpush3.bf16.msra.mxu1 %v4296_v18 }
 0x4da   : > { %2253 = vmatprep.subr.bf16.mxu0 %v4220_v37  ;;  %3107 = vmatprep.subr.bf16.mxu1 %v4604_v21 }
 0x587   : > { %v4379_v15 = vpop.f32.mrb[28].mxu1 }
 0x588   : > { %v4381_v43 = vpop.f32.mrb[29].mxu1 }
 0x589   : > { %v4383_v25 = vpop.f32.mrb[30].mxu1 }
 0x58a   : > { %v4385_v27 = vpop.f32.mrb[31].mxu1 }
 0x58f   : > { %v1988_v56 = vpop.f32.mrb[16].mxu0  ;;  %v2031_v24 = vpop.f32.mrb[32].mxu1 }
 0x590   : > { %v3163_v1 = vadd.f32 %v1988_v56, %v4392_v33  ;;  %v1990_v42 = vpop.f32.mrb[17].mxu0  ;;  %v3085_v49 = vpop.f32.mrb[33].mxu1 }
 0x591   : > { %v1992_v6 = vpop.f32.mrb[18].mxu0  ;;  %v2034_v52 = vpop.f32.mrb[34].mxu1  ;;  %v3164_v23 = vadd.f32 %v1990_v42, %v4398_v44  ;;  %v4409_v42 = vrot.slane %v1477_v30, %v421_v55 }
 0x592   : > { %v2772_v35 = vmul.f32 -1.442695, %v3163_v1  ;;  %v3165_v19 = vadd.f32 %v1992_v6, %v4392_v33  ;;  %v1994_v46 = vpop.f32.mrb[19].mxu0  ;;  %v3086_v20 = vpop.f32.mrb[35].mxu1 }
 0x593   : > { %v3166_v12 = vadd.f32 %v1994_v46, %v4398_v44  ;;  %v2774_v56 = vmul.f32 -1.442695, %v3164_v23 }
 0x594   : > { %3446 = vpow2.f32 %v2772_v35  ;;  %v2773_v14 = vmul.f32 -1.442695, %v3165_v19  ;;  %v2070_v35 = vadd.f32 %v4405_v31, %v2031_v24 }
 0x595   : > { %v2775_v3 = vmul.f32 -1.442695, %v3166_v12 }
 0x596   : > { %3448 = vpow2.f32 %v2773_v14 }
 0x597   : > { %3450 = vpow2.f32 %v2774_v56  ;;  %v1733_v56 = vadd.f32 %v4315_v39, %v4409_v42 }
 0x59e   : > { %v3447_v49 = vpop.eup %3446 }
 0x59f   : > { %v2046_v21 = vadd.f32 1.0, %v3447_v49 }
 0x5a0   : > { %v3449_v1 = vpop.eup %3448 }
 0x5a1   : > { %3452 = vrcp.f32 %v2046_v21  ;;  %v2047_v6 = vadd.f32 1.0, %v3449_v1  ;;  %v3451_v19 = vpop.eup %3450  ;;  %v1730_v21 = vadd.f32 %v4311_v36, %v4409_v42 }
 0x5a2   : > { %3454 = vpow2.f32 %v2775_v3  ;;  %v2071_v3 = vadd.f32 %v4405_v31, %v2034_v52  ;;  %v2060_v12 = vadd.f32 1.0, %v3451_v19 }
 0x5a3   : > { %3456 = vrcp.f32 %v2047_v6 }
 0x5ab   : > { %v3453_v46 = vpop.eup %3452 }
 0x5ac   : > { %v3455_v20 = vpop.eup %3454  ;;  %v2072_v14 = vmul.f32 %v3453_v46, %v2070_v35 }
 0x5ad   : > { %v3457_v23 = vpop.eup %3456  ;;  %v2061_v55 = vadd.f32 1.0, %v3455_v20 }
 0x5ae   : > { %v2074_v49 = vadd.f32 %v2072_v14, %v1730_v21  ;;  %v2073_v54 = vmul.f32 %v3457_v23, %v2071_v3 }
 0x5b0   : > { %3458 = vtanh.f32 %v2074_v49  ;;  %v2075_v30 = vadd.f32 %v2073_v54, %v1733_v56 }
 0x5b1   : > { %3460 = vrcp.f32 %v2060_v12 }
 0x5b2   : > { %3462 = vtanh.f32 %v2075_v30 }
 0x5b3   : > { %3464 = vrcp.f32 %v2061_v55 }
 0x5ba   : > { %v3459_v24 = vpop.eup %3458 }
 0x5bb   : > { %v3461_v1 = vpop.eup %3460  ;;  %v2078_v36 = vsub.f32 %v4336_v22, %v3459_v24 }
 0x5bc   : > { %v3463_v6 = vpop.eup %3462 }
 0x5bd   : > { %v2079_v52 = vsub.f32 %v4338_v9, %v3463_v6  ;;  %v2080_v35 = vmul.f32 %v3461_v1, %v2078_v36  ;;  %v3465_v19 = vpop.eup %3464 }
 0x5bf   : > { %v2081_v46 = vmul.f32 %v3465_v19, %v2079_v52  ;;  %v2082_v39 = vadd.f32 %v3459_v24, %v2080_v35 }
 0x5c1   : > { %v2083_v21 = vadd.f32 %v3463_v6, %v2081_v46  ;;  %v2084_v20 = vsel %vm966_vm10, %v2082_v39, 0.0  ;;  %v4426_v3 = vsel %vm966_vm10, %v2082_v39, %v4336_v22  ;;  %v4618_v22 = vmov 0  }
 0x5c3   : > { %v2085_v14 = vsel %vm967_vm11, %v2083_v21, 0.0  ;;  %v4431_v23 = vsel %vm967_vm11, %v2083_v21, %v4338_v9 }
 0x5c4   : > { %v2817_v12 = vpack.c.bf16 %v2085_v14, %v2084_v20  ;;  %v2104_v56 = vpack.c.bf16 %v4431_v23, %v4426_v3 }
 0x5c6   : > { %2818 = vst [vmem:[%s3812_s27] sm:$0xff] %v2817_v12   ;;  %2138 = vmatmul.mubr.bf16.vlgmr.msra.gmra.mrb[20].mxu0 %v2104_v56  ;;  %3104 = vmatmul.mubr.bf16.vlgmr.msra.gmra.mrb[36].mxu1 %v2104_v56 }
 0x5c7   : > { %2254 = vmatpush1.bf16.msra.mxu0 %v4222_v58  ;;  %3108 = vmatpush3.bf16.msra.mxu1 %v4258_v57 }
 0x5c8   : > { %2255 = vmatprep.subr.bf16.mxu0 %v4226_v61  ;;  %3109 = vmatprep.subr.bf16.mxu1 %v4617_v5 }
 0x5c9   : > { %2285 = vmatprep.mubr.bf16.mxu0 %v4618_v22  ;;  %3123 = vmatprep.mubr.msk.bf16.mxu1 %vm3634_vm1, %v4617_v5 }
 0x5cb   : > { %2256 = vmatpush1.bf16.msra.mxu0 %v4228_v0  ;;  %3110 = vmatpush3.bf16.msra.mxu1 %v4266_v28 }
 0x5cc   : > { %2257 = vmatprep.subr.bf16.mxu0 %v4232_v47  ;;  %3111 = vmatprep.subr.bf16.mxu1 %v4617_v5 }
 0x5cf   : > { %2258 = vmatpush1.bf16.msra.mxu0 %v4234_v48  ;;  %3112 = vmatpush3.bf16.msra.mxu1 %v4276_v50 }
 0x5d0   : > { %2259 = vmatprep.subr.bf16.mxu0 %v4236_v2  ;;  %3113 = vmatprep.subr.bf16.mxu1 %v4617_v5 }
 0x5d3   : > { %2260 = vmatpush1.bf16.msra.mxu0 %v4240_v7  ;;  %3114 = vmatpush3.bf16.msra.mxu1 %v4280_v13 }
 0x5d4   : > { %2261 = vmatprep.subr.bf16.mxu0 %v4243_v60  ;;  %3115 = vmatprep.subr.bf16.mxu1 %v4617_v5 }
 0x5d7   : > { %2262 = vmatpush1.bf16.msra.mxu0 %v4246_v11  ;;  %3116 = vmatpush3.bf16.msra.mxu1 %v4284_v10 }
 0x5d8   : > { %2263 = vmatprep.subr.bf16.mxu0 %v4249_v53  ;;  %3117 = vmatprep.subr.bf16.mxu1 %v4617_v5 }
 0x5db   : > { %2264 = vmatpush1.bf16.msra.mxu0 %v4252_v26  ;;  %3118 = vmatpush3.bf16.msra.mxu1 %v4288_v16 }
 0x5dc   : > { %2265 = vmatprep.subr.bf16.mxu0 %v4256_v51  ;;  %3119 = vmatprep.subr.bf16.mxu1 %v4617_v5 }
 0x5df   : > { %2266 = vmatpush1.bf16.msra.mxu0 %v4260_v63  ;;  %3120 = vmatpush3.bf16.msra.mxu1 %v4292_v17 }
 0x5e0   : > { %2267 = vmatprep.subr.bf16.mxu0 %v4262_v59  ;;  %3121 = vmatprep.subr.bf16.mxu1 %v4617_v5 }
 0x5e3   : > { %2268 = vmatpush1.bf16.msra.mxu0 %v4270_v62  ;;  %3122 = vmatpush3.bf16.msra.mxu1 %v4296_v18 }
 0x5e4   : > { %2401 = vmatprep.subr.bf16.mxu0 %v4220_v37  ;;  %3127 = vmatprep.subr.bf16.mxu1 %v4617_v5 }
 0x699   : > { %v2139_v32 = vpop.f32.mrb[20].mxu0  ;;  %v2182_v9 = vpop.f32.mrb[36].mxu1 }
 0x69a   : > { %v3167_v49 = vadd.f32 %v2139_v32, %v4392_v33  ;;  %v2141_v54 = vpop.f32.mrb[21].mxu0  ;;  %v3105_v55 = vpop.f32.mrb[37].mxu1  ;;  %v2217_v32 = vadd.f32 %v4405_v31, %v2182_v9 }
 0x69b   : > { %v2143_v30 = vpop.f32.mrb[22].mxu0  ;;  %v2185_v24 = vpop.f32.mrb[38].mxu1  ;;  %v3168_v37 = vadd.f32 %v2141_v54, %v4398_v44  ;;  %v1738_v54 = vadd.f32 %v4308_v29, %v4409_v42 }
 0x69c   : > { %v2779_v1 = vmul.f32 -1.442695, %v3167_v49  ;;  %v3169_v36 = vadd.f32 %v2143_v30, %v4392_v33  ;;  %v2145_v6 = vpop.f32.mrb[23].mxu0  ;;  %v3106_v52 = vpop.f32.mrb[39].mxu1 }
 0x69d   : > { %v3170_v19 = vadd.f32 %v2145_v6, %v4398_v44  ;;  %v2781_v46 = vmul.f32 -1.442695, %v3168_v37  ;;  %v1741_v52 = vadd.f32 %v4313_v40, %v4409_v42 }
 0x69e   : > { %3466 = vpow2.f32 %v2779_v1  ;;  %v2780_v35 = vmul.f32 -1.442695, %v3169_v36  ;;  %v2218_v1 = vadd.f32 %v4405_v31, %v2185_v24 }
 0x69f   : > { %v2782_v21 = vmul.f32 -1.442695, %v3170_v19 }
 0x6a0   : > { %3468 = vpow2.f32 %v2780_v35 }
 0x6a1   : > { %3470 = vpow2.f32 %v2781_v46 }
 0x6a8   : > { %v3467_v39 = vpop.eup %3466 }
 0x6a9   : > { %v2197_v20 = vadd.f32 1.0, %v3467_v39 }
 0x6aa   : > { %v3469_v14 = vpop.eup %3468 }
 0x6ab   : > { %3472 = vrcp.f32 %v2197_v20  ;;  %v2198_v12 = vadd.f32 1.0, %v3469_v14  ;;  %v3471_v56 = vpop.eup %3470 }
 0x6ac   : > { %3474 = vpow2.f32 %v2782_v21  ;;  %v2211_v6 = vadd.f32 1.0, %v3471_v56 }
 0x6ad   : > { %3476 = vrcp.f32 %v2198_v12 }
 0x6b5   : > { %v3473_v49 = vpop.eup %3472 }
 0x6b6   : > { %v3475_v55 = vpop.eup %3474  ;;  %v2219_v30 = vmul.f32 %v3473_v49, %v2217_v32 }
 0x6b7   : > { %v3477_v36 = vpop.eup %3476  ;;  %v2212_v46 = vadd.f32 1.0, %v3475_v55 }
 0x6b8   : > { %v2221_v35 = vadd.f32 %v2219_v30, %v1738_v54  ;;  %v2220_v37 = vmul.f32 %v3477_v36, %v2218_v1  ;;  %v1749_v36 = vadd.f32 %v4385_v27, %v4409_v42 }
 0x6ba   : > { %3478 = vtanh.f32 %v2221_v35  ;;  %v2222_v19 = vadd.f32 %v2220_v37, %v1741_v52 }
 0x6bb   : > { %3480 = vrcp.f32 %v2211_v6 }
 0x6bc   : > { %3482 = vtanh.f32 %v2222_v19 }
 0x6bd   : > { %3484 = vrcp.f32 %v2212_v46 }
 0x6c4   : > { %v3479_v9 = vpop.eup %3478 }
 0x6c5   : > { %v3481_v39 = vpop.eup %3480  ;;  %v2225_v29 = vsub.f32 %v4426_v3, %v3479_v9 }
 0x6c6   : > { %v3483_v21 = vpop.eup %3482 }
 0x6c7   : > { %v2227_v24 = vmul.f32 %v3481_v39, %v2225_v29  ;;  %v2226_v20 = vsub.f32 %v4431_v23, %v3483_v21  ;;  %v3485_v14 = vpop.eup %3484 }
 0x6c9   : > { %v2228_v12 = vmul.f32 %v3485_v14, %v2226_v20  ;;  %v2229_v40 = vadd.f32 %v3479_v9, %v2227_v24 }
 0x6cb   : > { %v2230_v56 = vadd.f32 %v3483_v21, %v2228_v12  ;;  %v2231_v32 = vsel %vm1120_vm12, %v2229_v40, 0.0  ;;  %v4490_v55 = vsel %vm1120_vm12, %v2229_v40, %v4426_v3 }
 0x6cd   : > { %v2232_v49 = vsel %vm1121_vm13, %v2230_v56, 0.0  ;;  %v4495_v54 = vsel %vm1121_vm13, %v2230_v56, %v4431_v23 }
 0x6ce   : > { %v2822_v30 = vpack.c.bf16 %v2232_v49, %v2231_v32  ;;  %v2252_v1 = vpack.c.bf16 %v4495_v54, %v4490_v55 }
 0x6d0   : > { %2834 = vst [vmem:[%s3812_s27 + $0x8] sm:$0xff] %v2822_v30   ;;  %2286 = vmatmul.mubr.bf16.vlgmr.msra.gmra.mrb[24].mxu0 %v2252_v1  ;;  %3124 = vmatmul.mubr.bf16.vlgmr.msra.gmra.mrb[40].mxu1 %v2252_v1 }
 0x6d1   : > { %2402 = vmatpush1.bf16.msra.mxu0 %v4222_v58  ;;  %3128 = vmatpush3.bf16.msra.mxu1 %v4258_v57 }
 0x6d2   : > { %2403 = vmatprep.subr.bf16.mxu0 %v4226_v61  ;;  %3129 = vmatprep.subr.bf16.mxu1 %v4617_v5 }
 0x6d3   : > { %2433 = vmatprep.mubr.bf16.mxu0 %v4618_v22  ;;  %3143 = vmatprep.mubr.msk.bf16.mxu1 %vm3634_vm1, %v4617_v5 }
 0x6d5   : > { %2404 = vmatpush1.bf16.msra.mxu0 %v4228_v0  ;;  %3130 = vmatpush3.bf16.msra.mxu1 %v4266_v28 }
 0x6d6   : > { %2405 = vmatprep.subr.bf16.mxu0 %v4232_v47  ;;  %3131 = vmatprep.subr.bf16.mxu1 %v4617_v5 }
 0x6d9   : > { %2406 = vmatpush1.bf16.msra.mxu0 %v4234_v48  ;;  %3132 = vmatpush3.bf16.msra.mxu1 %v4276_v50 }
 0x6da   : > { %2407 = vmatprep.subr.bf16.mxu0 %v4236_v2  ;;  %3133 = vmatprep.subr.bf16.mxu1 %v4617_v5 }
 0x6dd   : > { %2408 = vmatpush1.bf16.msra.mxu0 %v4240_v7  ;;  %3134 = vmatpush3.bf16.msra.mxu1 %v4280_v13 }
 0x6de   : > { %2409 = vmatprep.subr.bf16.mxu0 %v4243_v60  ;;  %3135 = vmatprep.subr.bf16.mxu1 %v4617_v5 }
 0x6e1   : > { %2410 = vmatpush1.bf16.msra.mxu0 %v4246_v11  ;;  %3136 = vmatpush3.bf16.msra.mxu1 %v4284_v10 }
 0x6e2   : > { %2411 = vmatprep.subr.bf16.mxu0 %v4249_v53  ;;  %3137 = vmatprep.subr.bf16.mxu1 %v4617_v5 }
 0x6e5   : > { %2412 = vmatpush1.bf16.msra.mxu0 %v4252_v26  ;;  %3138 = vmatpush3.bf16.msra.mxu1 %v4288_v16 }
 0x6e6   : > { %2413 = vmatprep.subr.bf16.mxu0 %v4256_v51  ;;  %3139 = vmatprep.subr.bf16.mxu1 %v4617_v5 }
 0x6e9   : > { %2414 = vmatpush1.bf16.msra.mxu0 %v4260_v63  ;;  %3140 = vmatpush3.bf16.msra.mxu1 %v4292_v17 }
 0x6ea   : > { %2415 = vmatprep.subr.bf16.mxu0 %v4262_v59  ;;  %3141 = vmatprep.subr.bf16.mxu1 %v4617_v5 }
 0x6ed   : > { %2416 = vmatpush1.bf16.msra.mxu0 %v4270_v62  ;;  %3142 = vmatpush3.bf16.msra.mxu1 %v4296_v18  ;;  %v1746_v18 = vadd.f32 %v4381_v43, %v4409_v42 }
 0x7a3   : > { %v2287_v41 = vpop.f32.mrb[24].mxu0  ;;  %v2330_v38 = vpop.f32.mrb[40].mxu1 }
 0x7a4   : > { %v3171_v58 = vadd.f32 %v2287_v41, %v4392_v33  ;;  %v2289_v61 = vpop.f32.mrb[25].mxu0  ;;  %v3125_v0 = vpop.f32.mrb[41].mxu1  ;;  %v2365_v10 = vadd.f32 %v4405_v31, %v2330_v38 }
 0x7a5   : > { %v2291_v47 = vpop.f32.mrb[26].mxu0  ;;  %v2333_v48 = vpop.f32.mrb[42].mxu1  ;;  %v3172_v26 = vadd.f32 %v2289_v61, %v4398_v44 }
 0x7a6   : > { %v2787_v2 = vmul.f32 -1.442695, %v3171_v58  ;;  %v3173_v7 = vadd.f32 %v2291_v47, %v4392_v33  ;;  %v2293_v60 = vpop.f32.mrb[27].mxu0  ;;  %v3126_v11 = vpop.f32.mrb[43].mxu1  ;;  %v2366_v23 = vadd.f32 %v4405_v31, %v2333_v48 }
 0x7a7   : > { %v3174_v51 = vadd.f32 %v2293_v60, %v4398_v44  ;;  %v2789_v57 = vmul.f32 -1.442695, %v3172_v26 }
 0x7a8   : > { %3486 = vpow2.f32 %v2787_v2  ;;  %v2788_v53 = vmul.f32 -1.442695, %v3173_v7 }
 0x7a9   : > { %v2790_v59 = vmul.f32 -1.442695, %v3174_v51 }
 0x7aa   : > { %3488 = vpow2.f32 %v2788_v53 }
 0x7ab   : > { %3490 = vpow2.f32 %v2789_v57 }
 0x7b2   : > { %v3487_v63 = vpop.eup %3486 }
 0x7b3   : > { %v2345_v28 = vadd.f32 1.0, %v3487_v63 }
 0x7b4   : > { %v3489_v62 = vpop.eup %3488 }
 0x7b5   : > { %3492 = vrcp.f32 %v2345_v28  ;;  %v2346_v50 = vadd.f32 1.0, %v3489_v62  ;;  %v3491_v13 = vpop.eup %3490  ;;  %v1754_v28 = vadd.f32 %v4379_v15, %v4409_v42 }
 0x7b6   : > { %3494 = vpow2.f32 %v2790_v59  ;;  %v2359_v22 = vadd.f32 1.0, %v3491_v13 }
 0x7b7   : > { %3496 = vrcp.f32 %v2346_v50 }
 0x7bf   : > { %v3493_v16 = vpop.eup %3492 }
 0x7c0   : > { %v3495_v17 = vpop.eup %3494  ;;  %v2367_v3 = vmul.f32 %v3493_v16, %v2365_v10  ;;  %v1757_v10 = vadd.f32 %v4383_v25, %v4409_v42 }
 0x7c1   : > { %v3497_v5 = vpop.eup %3496  ;;  %v2360_v37 = vadd.f32 1.0, %v3495_v17 }
 0x7c2   : > { %v2369_v6 = vadd.f32 %v2367_v3, %v1746_v18  ;;  %v2368_v52 = vmul.f32 %v3497_v5, %v2366_v23 }
 0x7c4   : > { %3498 = vtanh.f32 %v2369_v6  ;;  %v2370_v35 = vadd.f32 %v2368_v52, %v1749_v36 }
 0x7c5   : > { %3500 = vrcp.f32 %v2359_v22 }
 0x7c6   : > { %3502 = vtanh.f32 %v2370_v35 }
 0x7c7   : > { %3504 = vrcp.f32 %v2360_v37 }
 0x7ce   : > { %v3499_v19 = vpop.eup %3498 }
 0x7cf   : > { %v3501_v46 = vpop.eup %3500  ;;  %v2373_v43 = vsub.f32 %v4490_v55, %v3499_v19 }
 0x7d0   : > { %v3503_v9 = vpop.eup %3502 }
 0x7d1   : > { %v2375_v39 = vmul.f32 %v3501_v46, %v2373_v43  ;;  %v2374_v29 = vsub.f32 %v4495_v54, %v3503_v9  ;;  %v3505_v21 = vpop.eup %3504 }
 0x7d3   : > { %v2376_v24 = vmul.f32 %v3505_v21, %v2374_v29  ;;  %v2377_v27 = vadd.f32 %v3499_v19, %v2375_v39 }
 0x7d5   : > { %v2378_v20 = vadd.f32 %v3503_v9, %v2376_v24  ;;  %v2379_v14 = vsel %vm1275_vm15, %v2377_v27, 0.0  ;;  %v2392_v40 = vsel %vm1275_vm15, %v2377_v27, %v4490_v55 }
 0x7d7   : > { %v2380_v12 = vsel %vm1276_vm14, %v2378_v20, 0.0  ;;  %v4555_v56 = vsel %vm1276_vm14, %v2378_v20, %v4495_v54 }
 0x7d8   : > { %v2827_v32 = vpack.c.bf16 %v2380_v12, %v2379_v14  ;;  %v2400_v49 = vpack.c.bf16 %v4555_v56, %v2392_v40 }
 0x7da   : > { %2835 = vst [vmem:[%s3812_s27 + $0x10] sm:$0xff] %v2827_v32   ;;  %2434 = vmatmul.mubr.bf16.vlgmr.msra.gmra.mrb[28].mxu0 %v2400_v49  ;;  %3144 = vmatmul.mubr.bf16.vlgmr.msra.gmra.mrb[44].mxu1 %v2400_v49 }
 0x8ad   : > { %v2435_v30 = vpop.f32.mrb[28].mxu0  ;;  %v2478_v1 = vpop.f32.mrb[44].mxu1 }
 0x8ae   : > { %v3175_v41 = vadd.f32 %v2435_v30, %v4392_v33  ;;  %v2437_v38 = vpop.f32.mrb[29].mxu0  ;;  %v3145_v58 = vpop.f32.mrb[45].mxu1  ;;  %v2513_v57 = vadd.f32 %v4405_v31, %v2478_v1 }
 0x8af   : > { %v2439_v61 = vpop.f32.mrb[30].mxu0  ;;  %v2481_v8 = vpop.f32.mrb[46].mxu1  ;;  %v3176_v48 = vadd.f32 %v2437_v38, %v4398_v44 }
 0x8b0   : > { %v2795_v55 = vmul.f32 -1.442695, %v3175_v41  ;;  %v3177_v0 = vadd.f32 %v2439_v61, %v4392_v33  ;;  %v2441_v4 = vpop.f32.mrb[31].mxu0  ;;  %v3146_v54 = vpop.f32.mrb[47].mxu1 }
 0x8b1   : > { %v3178_v2 = vadd.f32 %v2441_v4, %v4398_v44  ;;  %v2797_v7 = vmul.f32 -1.442695, %v3176_v48  ;;  %v2514_v44 = vadd.f32 %v4405_v31, %v2481_v8 }
 0x8b2   : > { %3506 = vpow2.f32 %v2795_v55  ;;  %v2796_v47 = vmul.f32 -1.442695, %v3177_v0 }
 0x8b3   : > { %v2798_v11 = vmul.f32 -1.442695, %v3178_v2 }
 0x8b4   : > { %3508 = vpow2.f32 %v2796_v47 }
 0x8b5   : > { %3510 = vpow2.f32 %v2797_v7 }
 0x8bc   : > { %v3507_v60 = vpop.eup %3506 }
 0x8bd   : > { %v2493_v53 = vadd.f32 1.0, %v3507_v60 }
 0x8be   : > { %v3509_v26 = vpop.eup %3508 }
 0x8bf   : > { %3512 = vrcp.f32 %v2493_v53  ;;  %v2494_v51 = vadd.f32 1.0, %v3509_v26  ;;  %v3511_v33 = vpop.eup %3510 }
 0x8c0   : > { %3514 = vpow2.f32 %v2798_v11  ;;  %v2507_v13 = vadd.f32 1.0, %v3511_v33 }
 0x8c1   : > { %3516 = vrcp.f32 %v2494_v51 }
 0x8c9   : > { %v3513_v63 = vpop.eup %3512 }
 0x8ca   : > { %v3515_v59 = vpop.eup %3514  ;;  %v2515_v62 = vmul.f32 %v3513_v63, %v2513_v57 }
 0x8cb   : > { %v3517_v50 = vpop.eup %3516  ;;  %v2508_v3 = vadd.f32 1.0, %v3515_v59 }
 0x8cc   : > { %v2517_v16 = vadd.f32 %v2515_v62, %v1754_v28  ;;  %v2516_v17 = vmul.f32 %v3517_v50, %v2514_v44 }
 0x8ce   : > { %3518 = vtanh.f32 %v2517_v16  ;;  %v2518_v18 = vadd.f32 %v2516_v17, %v1757_v10 }
 0x8cf   : > { %3520 = vrcp.f32 %v2507_v13 }
 0x8d0   : > { %3522 = vtanh.f32 %v2518_v18 }
 0x8d1   : > { %3524 = vrcp.f32 %v2508_v3 }
 0x8d8   : > { %v3519_v23 = vpop.eup %3518 }
 0x8d9   : > { %v3521_v5 = vpop.eup %3520  ;;  %v2521_v15 = vsub.f32 %v2392_v40, %v3519_v23 }
 0x8da   : > { %v3523_v22 = vpop.eup %3522 }
 0x8db   : > { %v2523_v36 = vmul.f32 %v3521_v5, %v2521_v15  ;;  %v2522_v31 = vsub.f32 %v4555_v56, %v3523_v22  ;;  %v3525_v6 = vpop.eup %3524 }
 0x8dd   : > { %v2525_v52 = vadd.f32 %v3519_v23, %v2523_v36  ;;  %v2524_v35 = vmul.f32 %v3525_v6, %v2522_v31 }
 0x8de   : > { %2547 = sbr.rel (%p2803_p10) target bundleno = 2283 (0x8eb), region = 72 }
 0x8df   : > { %v2540_v25 = vsel %vm1430_vm4, %v2525_v52, %v2392_v40  ;;  %v2526_v42 = vadd.f32 %v3523_v22, %v2524_v35  ;;  %v2527_v37 = vsel %vm1430_vm4, %v2525_v52, 0.0 }
 0x8e0   : > { %2542 = vst [vmem:[#allocation3] sm:$0xff] %v2540_v25 }
 0x8e1   : > { %v2528_v19 = vsel %vm1431_vm5, %v2526_v42, 0.0  ;;  %v2541_v46 = vsel %vm1431_vm5, %v2526_v42, %v4555_v56 }
 0x8e2   : > { %v2832_v43 = vpack.c.bf16 %v2528_v19, %v2527_v37  ;;  %2543 = vst [vmem:[#allocation3 + $0x8] sm:$0xff] %v2541_v46 }
 0x8e4   : > { %2836 = vst [vmem:[%s3812_s27 + $0x18] sm:$0xff] %v2832_v43  }
 0x8e7   : > { %v2548_v9 = vld [vmem:[#allocation3] sm:$0xff] }
 0x8e8   : > { %2550 = vst [vmem:[%s4599_s9] sm:$0xff] %v2548_v9 }
 0x8e9   : > { %v2549_v39 = vld [vmem:[#allocation3 + $0x8] sm:$0xff] }
 0x8ea   : > { %2551 = vst [vmem:[%s4599_s9 + $0x8] sm:$0xff] %v2549_v39 }
 0x8eb PF: > { %s22_s30 = sadd.s32 1, %s3624_s30  }
 0x8ec   : > { %p19_p11 = scmp.ge.s32.totalorder %s22_s30, 4  }
 0x8ee   :  { %21 = sbr.rel (!%p19_p11) target bundleno = 2 (0x2), region = 121 }
 0x8f5   :  { %2580 = vsyncpa [#allocation7], 1 }
 0x8f6   :  { %2582 = vsyncpa [#allocation7 + $0x1], 1 }
 0x8f7   :  { %2583 = vsyncpa [#allocation9], 1 }

</bundles_post_ra>
